<compile_context>
chip_gen: v7x
topology: tpu7x:2x2x1
jax: 0.10.0
libtpu: 0.0.40
codegen_flags: <defaults>
</compile_context>

<pallas_src>
import functools
import math

import jax
import jax.numpy as jnp
from jax import lax
from jax.experimental import pallas as pl
from jax.experimental.pallas import tpu as pltpu


def _gelu(x):
    # TODO(synk): nn.GELU() default is exact erf-GELU; tanh approximation is used
    # because erf is not guaranteed to lower in Mosaic (difference ~1e-3).
    return jax.nn.gelu(x, approximate=True)


def _layernorm(x, g, b):
    mean = jnp.mean(x, axis=-1, keepdims=True)
    xc = x - mean
    var = jnp.mean(xc * xc, axis=-1, keepdims=True)
    return xc * lax.rsqrt(var + 1e-5) * g + b


# ----------------------------- fused DecodeBlock kernel ------------------------------------
def _decode_block_kernel(x_ref, rep_ref,
                         a1_wkvq_ref, a1_bkvq_ref, a1_wp_ref, a1_bp_ref,
                         a2_wkv_ref, a2_bkv_ref, a2_wq_ref, a2_bq_ref,
                         a2_wp_ref, a2_bp_ref,
                         ln1_g_ref, ln1_b_ref, ln2_g_ref, ln2_b_ref,
                         ln3_g_ref, ln3_b_ref,
                         fc1_w_ref, fc1_b_ref, fc2_w_ref, fc2_b_ref,
                         o_ref, *, n_head):
    x = x_ref[0]          # (L, D)
    rep = rep_ref[0]      # (L, D)
    L, D = x.shape
    dh = D // n_head

    # causal mask built ONCE, shared by both attention calls (hoisted out of head loop)
    row = lax.broadcasted_iota(jnp.int32, (L, L), 0)
    col = lax.broadcasted_iota(jnp.int32, (L, L), 1)
    causal = col <= row

    def mha(q, k, v, wp, bp):
        # Per-head softmax(QK^T)V; each head's (L, dh) output is immediately folded
        # through the matching dh rows of the output projection so the running
        # accumulator is always a full-width (L, D) tile (lane-dense, no masked
        # partial stores, no concat). Query scale is pre-folded into q.
        acc = None
        for h in range(n_head):                      # static unrolled head loop
            sl = slice(h * dh, (h + 1) * dh)
            att = lax.dot_general(q[:, sl], k[:, sl], (((1,), (1,)), ((), ())),
                                  preferred_element_type=jnp.float32)      # (L, L)
            att = jnp.where(causal, att, -1e30)
            att = jnp.exp(att - jnp.max(att, axis=-1, keepdims=True))
            # divide -> EUP reciprocal (separate VLIW slot, frees VALU)
            att = att * pl.reciprocal(jnp.sum(att, axis=-1, keepdims=True), approx=True)
            yh = jnp.dot(att, v[:, sl], preferred_element_type=jnp.float32)   # (L, dh)
            ph = jnp.dot(yh, wp[sl, :], preferred_element_type=jnp.float32)   # (L, D)
            acc = ph if acc is None else acc + ph
        return acc + bp

    # ---- attn1: masked self-attention on x; K|V|Q fused into one (D, 3D) matmul ----
    kvq = jnp.dot(x, a1_wkvq_ref[...], preferred_element_type=jnp.float32) + a1_bkvq_ref[...]
    a1 = mha(kvq[:, 2 * D:], kvq[:, :D], kvq[:, D:2 * D], a1_wp_ref[...], a1_bp_ref[...])
    x = _layernorm(x + a1, ln1_g_ref[...], ln1_b_ref[...])

    # ---- attn2: masked cross-attention, key=value=x, query=rep_enc; K|V fused ----
    kv = jnp.dot(x, a2_wkv_ref[...], preferred_element_type=jnp.float32) + a2_bkv_ref[...]
    q = jnp.dot(rep, a2_wq_ref[...], preferred_element_type=jnp.float32) + a2_bq_ref[...]
    a2 = mha(q, kv[:, :D], kv[:, D:], a2_wp_ref[...], a2_bp_ref[...])
    x = _layernorm(rep + a2, ln2_g_ref[...], ln2_b_ref[...])

    # ---- MLP: Linear -> GELU -> Linear ----
    m = _gelu(jnp.dot(x, fc1_w_ref[...], preferred_element_type=jnp.float32) + fc1_b_ref[...])
    m = jnp.dot(m, fc2_w_ref[...], preferred_element_type=jnp.float32) + fc2_b_ref[...]
    o_ref[0] = _layernorm(x + m, ln3_g_ref[...], ln3_b_ref[...])


# ----------------------------- Python wrapper ----------------------------------------------
def decode_block(params, x, rep_enc, *, n_head):
    """Fused DecodeBlock.forward(x, rep_enc): one pallas_call for the whole block."""
    B, L, D = x.shape
    scale = 1.0 / math.sqrt(D // n_head)
    a1, a2 = params["attn1"], params["attn2"]

    # Parameter prep (would be hoisted to init time in a real model):
    #  - fuse K|V|Q (attn1) and K|V (attn2) weights so the kernel does one wide matmul,
    #  - fold the 1/sqrt(dh) attention scale into the query projection.
    a1_wkvq = jnp.concatenate([a1["wk"], a1["wv"], a1["wq"] * scale], axis=1)   # (D, 3D)
    a1_bkvq = jnp.concatenate([a1["bk"], a1["bv"], a1["bq"] * scale], axis=1)   # (1, 3D)
    a2_wkv = jnp.concatenate([a2["wk"], a2["wv"]], axis=1)                      # (D, 2D)
    a2_bkv = jnp.concatenate([a2["bk"], a2["bv"]], axis=1)                      # (1, 2D)

    weights = (a1_wkvq, a1_bkvq, a1["wp"], a1["bp"],
               a2_wkv, a2_bkv, a2["wq"] * scale, a2["bq"] * scale, a2["wp"], a2["bp"],
               params["ln1_g"], params["ln1_b"], params["ln2_g"], params["ln2_b"],
               params["ln3_g"], params["ln3_b"],
               params["fc1_w"], params["fc1_b"], params["fc2_w"], params["fc2_b"])

    seq_spec = pl.BlockSpec((1, L, D), lambda b: (b, 0, 0))
    # Whole weight arrays resident in VMEM for the full kernel -> single DMA each,
    # no per-grid-step re-fetch and no double-buffering of constants.
    w_spec = pl.BlockSpec(memory_space=pltpu.MemorySpace.VMEM)

    return pl.pallas_call(
        functools.partial(_decode_block_kernel, n_head=n_head),
        out_shape=jax.ShapeDtypeStruct((B, L, D), jnp.float32),
        grid=(B,),
        in_specs=[seq_spec, seq_spec] + [w_spec] * len(weights),
        out_specs=pl.BlockSpec((1, L, D), lambda b: (b, 0, 0)),
        compiler_params=pltpu.CompilerParams(
            dimension_semantics=("parallel",),          # batch axis feeds both TCs on v7x
            vmem_limit_bytes=32 * 1024 * 1024),         # explicit budget (v7x-safe)
    )(x, rep_enc, *weights)


# ----------------------------- Pure-JAX reference (for validation) -------------------------
def _ref_layernorm(x, g, b):
    mean = jnp.mean(x, axis=-1, keepdims=True)
    var = jnp.mean((x - mean) ** 2, axis=-1, keepdims=True)
    return (x - mean) / jnp.sqrt(var + 1e-5) * g + b


def _ref_attention(key_in, value_in, query_in, p, n_head, masked=True):
    B, L, D = query_in.shape
    dh = D // n_head
    k = (key_in @ p["wk"] + p["bk"]).reshape(B, L, n_head, dh).transpose(0, 2, 1, 3)
    q = (query_in @ p["wq"] + p["bq"]).reshape(B, L, n_head, dh).transpose(0, 2, 1, 3)
    v = (value_in @ p["wv"] + p["bv"]).reshape(B, L, n_head, dh).transpose(0, 2, 1, 3)
    att = jnp.einsum("bhld,bhmd->bhlm", q, k) * (1.0 / math.sqrt(dh))
    if masked:
        mask = jnp.tril(jnp.ones((L, L)))
        att = jnp.where(mask == 0, -1e30, att)
    att = jax.nn.softmax(att, axis=-1)
    y = jnp.einsum("bhlm,bhmd->bhld", att, v).transpose(0, 2, 1, 3).reshape(B, L, D)
    return y @ p["wp"] + p["bp"]


def _ref_decode_block(params, x, rep_enc, *, n_head):
    x = _ref_layernorm(x + _ref_attention(x, x, x, params["attn1"], n_head),
                       params["ln1_g"], params["ln1_b"])
    x = _ref_layernorm(rep_enc + _ref_attention(x, x, rep_enc, params["attn2"], n_head),
                       params["ln2_g"], params["ln2_b"])
    m = _gelu(x @ params["fc1_w"] + params["fc1_b"])
    m = m @ params["fc2_w"] + params["fc2_b"]
    return _ref_layernorm(x + m, params["ln3_g"], params["ln3_b"])


# ----------------------------- Deterministic parameter init --------------------------------
def init_params(key, n_embd):
    relu_gain = math.sqrt(2.0)  # nn.init.calculate_gain('relu')
    keys = iter(jax.random.split(key, 16))

    def lin(din, dout, gain):
        w = jax.nn.initializers.orthogonal(gain)(next(keys), (din, dout), jnp.float32)
        b = jnp.zeros((1, dout), jnp.float32)   # init_ sets bias to 0
        return w, b

    def ln_pair(d):
        return jnp.ones((1, d), jnp.float32), jnp.zeros((1, d), jnp.float32)

    p = {}
    for name in ("attn1", "attn2"):
        a = {}
        a["wk"], a["bk"] = lin(n_embd, n_embd, 0.01)
        a["wq"], a["bq"] = lin(n_embd, n_embd, 0.01)
        a["wv"], a["bv"] = lin(n_embd, n_embd, 0.01)
        a["wp"], a["bp"] = lin(n_embd, n_embd, 0.01)
        p[name] = a
    p["ln1_g"], p["ln1_b"] = ln_pair(n_embd)
    p["ln2_g"], p["ln2_b"] = ln_pair(n_embd)
    p["ln3_g"], p["ln3_b"] = ln_pair(n_embd)
    p["fc1_w"], p["fc1_b"] = lin(n_embd, n_embd, relu_gain)   # activate=True -> relu gain
    p["fc2_w"], p["fc2_b"] = lin(n_embd, n_embd, 0.01)
    return p


if __name__ == "__main__":
    # shapes consistent with DecodeBlock(n_embd, n_head, n_agent): L = n_agent
    n_embd, n_head, n_agent = 32, 4, 3
    B, L = 2, n_agent

    root = jax.random.PRNGKey(0)
    k_par, k_x, k_rep = jax.random.split(root, 3)
    params = init_params(k_par, n_embd)

    x = jax.random.normal(k_x, (B, L, n_embd), jnp.float32)        # previous-layer activations
    rep_enc = jax.random.normal(k_rep, (B, L, n_embd), jnp.float32)  # encoder obs representation

    out = decode_block(params, x, rep_enc, n_head=n_head)
    out = jax.block_until_ready(out)

    ref = _ref_decode_block(params, x, rep_enc, n_head=n_head)
    err = float(jnp.max(jnp.abs(out - ref)))
    assert out.shape == (B, L, n_embd), out.shape
    assert err < 1e-2, f"max abs err {err}"
    print("KERNEL_OK")
</pallas_src>

<mosaic_0001>
module attributes {stable_mosaic.version = 11 : i64} {
  func.func @_decode_block_kernel(%arg0: i32, %arg1: memref<1x3x32xf32, #tpu.memory_space<vmem>>, %arg2: memref<1x3x32xf32, #tpu.memory_space<vmem>>, %arg3: memref<32x96xf32, #tpu.memory_space<vmem>>, %arg4: memref<1x96xf32, #tpu.memory_space<vmem>>, %arg5: memref<32x32xf32, #tpu.memory_space<vmem>>, %arg6: memref<1x32xf32, #tpu.memory_space<vmem>>, %arg7: memref<32x64xf32, #tpu.memory_space<vmem>>, %arg8: memref<1x64xf32, #tpu.memory_space<vmem>>, %arg9: memref<32x32xf32, #tpu.memory_space<vmem>>, %arg10: memref<1x32xf32, #tpu.memory_space<vmem>>, %arg11: memref<32x32xf32, #tpu.memory_space<vmem>>, %arg12: memref<1x32xf32, #tpu.memory_space<vmem>>, %arg13: memref<1x32xf32, #tpu.memory_space<vmem>>, %arg14: memref<1x32xf32, #tpu.memory_space<vmem>>, %arg15: memref<1x32xf32, #tpu.memory_space<vmem>>, %arg16: memref<1x32xf32, #tpu.memory_space<vmem>>, %arg17: memref<1x32xf32, #tpu.memory_space<vmem>>, %arg18: memref<1x32xf32, #tpu.memory_space<vmem>>, %arg19: memref<32x32xf32, #tpu.memory_space<vmem>>, %arg20: memref<1x32xf32, #tpu.memory_space<vmem>>, %arg21: memref<32x32xf32, #tpu.memory_space<vmem>>, %arg22: memref<1x32xf32, #tpu.memory_space<vmem>>, %arg23: memref<1x3x32xf32, #tpu.memory_space<vmem>>) attributes {dimension_semantics = [#tpu.dimension_semantics<parallel>], iteration_bounds = array<i64: 2>, scalar_prefetch = 0 : i64, scratch_operands = 0 : i64, tpu.core_type = #tpu.core_type<tc>, window_params = [{transform_indices = @transform_0, window_bounds = array<i64: 1, 3, 32>}, {transform_indices = @transform_1, window_bounds = array<i64: 1, 3, 32>}, {pipeline_mode = #tpu.pipeline_mode<synchronous>, transform_indices = @transform_2, window_bounds = array<i64: 32, 96>}, {pipeline_mode = #tpu.pipeline_mode<synchronous>, transform_indices = @transform_3, window_bounds = array<i64: 1, 96>}, {pipeline_mode = #tpu.pipeline_mode<synchronous>, transform_indices = @transform_4, window_bounds = array<i64: 32, 32>}, {pipeline_mode = #tpu.pipeline_mode<synchronous>, transform_indices = @transform_5, window_bounds = array<i64: 1, 32>}, {pipeline_mode = #tpu.pipeline_mode<synchronous>, transform_indices = @transform_6, window_bounds = array<i64: 32, 64>}, {pipeline_mode = #tpu.pipeline_mode<synchronous>, transform_indices = @transform_7, window_bounds = array<i64: 1, 64>}, {pipeline_mode = #tpu.pipeline_mode<synchronous>, transform_indices = @transform_8, window_bounds = array<i64: 32, 32>}, {pipeline_mode = #tpu.pipeline_mode<synchronous>, transform_indices = @transform_9, window_bounds = array<i64: 1, 32>}, {pipeline_mode = #tpu.pipeline_mode<synchronous>, transform_indices = @transform_10, window_bounds = array<i64: 32, 32>}, {pipeline_mode = #tpu.pipeline_mode<synchronous>, transform_indices = @transform_11, window_bounds = array<i64: 1, 32>}, {pipeline_mode = #tpu.pipeline_mode<synchronous>, transform_indices = @transform_12, window_bounds = array<i64: 1, 32>}, {pipeline_mode = #tpu.pipeline_mode<synchronous>, transform_indices = @transform_13, window_bounds = array<i64: 1, 32>}, {pipeline_mode = #tpu.pipeline_mode<synchronous>, transform_indices = @transform_14, window_bounds = array<i64: 1, 32>}, {pipeline_mode = #tpu.pipeline_mode<synchronous>, transform_indices = @transform_15, window_bounds = array<i64: 1, 32>}, {pipeline_mode = #tpu.pipeline_mode<synchronous>, transform_indices = @transform_16, window_bounds = array<i64: 1, 32>}, {pipeline_mode = #tpu.pipeline_mode<synchronous>, transform_indices = @transform_17, window_bounds = array<i64: 1, 32>}, {pipeline_mode = #tpu.pipeline_mode<synchronous>, transform_indices = @transform_18, window_bounds = array<i64: 32, 32>}, {pipeline_mode = #tpu.pipeline_mode<synchronous>, transform_indices = @transform_19, window_bounds = array<i64: 1, 32>}, {pipeline_mode = #tpu.pipeline_mode<synchronous>, transform_indices = @transform_20, window_bounds = array<i64: 32, 32>}, {pipeline_mode = #tpu.pipeline_mode<synchronous>, transform_indices = @transform_21, window_bounds = array<i64: 1, 32>}, {transform_indices = @transform_22, window_bounds = array<i64: 1, 3, 32>}]} {
    %c0 = arith.constant 0 : index
    %c0_0 = arith.constant 0 : index
    %c0_1 = arith.constant 0 : index
    %0 = vector.load %arg1[%c0, %c0_0, %c0_1] : memref<1x3x32xf32, #tpu.memory_space<vmem>>, vector<1x3x32xf32>
    %1 = vector.shape_cast %0 : vector<1x3x32xf32> to vector<3x32xf32>
    %c0_2 = arith.constant 0 : index
    %c0_3 = arith.constant 0 : index
    %c0_4 = arith.constant 0 : index
    %2 = vector.load %arg2[%c0_2, %c0_3, %c0_4] : memref<1x3x32xf32, #tpu.memory_space<vmem>>, vector<1x3x32xf32>
    %3 = vector.shape_cast %2 : vector<1x3x32xf32> to vector<3x32xf32>
    %4 = tpu.iota {dimensions = array<i32: 0>} : vector<3x3xi32>
    %5 = tpu.iota {dimensions = array<i32: 1>} : vector<3x3xi32>
    %6 = arith.cmpi sle, %5, %4 : vector<3x3xi32>
    %c0_5 = arith.constant 0 : index
    %c0_6 = arith.constant 0 : index
    %7 = vector.load %arg3[%c0_5, %c0_6] : memref<32x96xf32, #tpu.memory_space<vmem>>, vector<32x96xf32>
    %cst = arith.constant dense<0.000000e+00> : vector<3x96xf32>
    %8 = tpu.matmul %1, %7, %cst {dimension_numbers = #tpu.dot_dimension_numbers<[1], [0], [0], [1], [0, 0, 1, 1], [], []>} : vector<3x32xf32>, vector<32x96xf32>, vector<3x96xf32> -> vector<3x96xf32>
    %c0_7 = arith.constant 0 : index
    %c0_8 = arith.constant 0 : index
    %9 = vector.load %arg4[%c0_7, %c0_8] : memref<1x96xf32, #tpu.memory_space<vmem>>, vector<1x96xf32>
    %10 = vector.broadcast %9 : vector<1x96xf32> to vector<3x96xf32>
    %11 = arith.addf %8, %10 : vector<3x96xf32>
    %12 = vector.extract_strided_slice %11 {offsets = [0, 64], sizes = [3, 32], strides = [1, 1]} : vector<3x96xf32> to vector<3x32xf32>
    %13 = vector.extract_strided_slice %11 {offsets = [0, 0], sizes = [3, 32], strides = [1, 1]} : vector<3x96xf32> to vector<3x32xf32>
    %14 = vector.extract_strided_slice %11 {offsets = [0, 32], sizes = [3, 32], strides = [1, 1]} : vector<3x96xf32> to vector<3x32xf32>
    %c0_9 = arith.constant 0 : index
    %c0_10 = arith.constant 0 : index
    %15 = vector.load %arg5[%c0_9, %c0_10] : memref<32x32xf32, #tpu.memory_space<vmem>>, vector<32x32xf32>
    %c0_11 = arith.constant 0 : index
    %c0_12 = arith.constant 0 : index
    %16 = vector.load %arg6[%c0_11, %c0_12] : memref<1x32xf32, #tpu.memory_space<vmem>>, vector<1x32xf32>
    %17 = vector.extract_strided_slice %12 {offsets = [0, 0], sizes = [3, 8], strides = [1, 1]} : vector<3x32xf32> to vector<3x8xf32>
    %18 = vector.extract_strided_slice %13 {offsets = [0, 0], sizes = [3, 8], strides = [1, 1]} : vector<3x32xf32> to vector<3x8xf32>
    %cst_13 = arith.constant dense<0.000000e+00> : vector<3x3xf32>
    %19 = tpu.matmul %17, %18, %cst_13 {dimension_numbers = #tpu.dot_dimension_numbers<[1], [1], [0], [0], [0, 0, 1, 0], [], []>} : vector<3x8xf32>, vector<3x8xf32>, vector<3x3xf32> -> vector<3x3xf32>
    %cst_14 = arith.constant -1.000000e+30 : f32
    %20 = vector.broadcast %cst_14 : f32 to vector<3x3xf32>
    %21 = arith.select %6, %19, %20 : vector<3x3xi1>, vector<3x3xf32>
    %cst_15 = arith.constant dense<0xFF800000> : vector<3xf32>
    %22 = vector.multi_reduction <maximumf>, %21, %cst_15 [1] : vector<3x3xf32> to vector<3xf32>
    %23 = vector.shape_cast %22 : vector<3xf32> to vector<3x1xf32>
    %24 = vector.broadcast %23 : vector<3x1xf32> to vector<3x3xf32>
    %25 = arith.subf %21, %24 : vector<3x3xf32>
    %26 = math.exp %25 : vector<3x3xf32>
    %cst_16 = arith.constant dense<0.000000e+00> : vector<3xf32>
    %27 = vector.multi_reduction <add>, %26, %cst_16 [1] : vector<3x3xf32> to vector<3xf32>
    %28 = vector.shape_cast %27 : vector<3xf32> to vector<3x1xf32>
    %29 = tpu.reciprocal %28 {approx = true} : vector<3x1xf32> -> vector<3x1xf32>
    %30 = vector.broadcast %29 : vector<3x1xf32> to vector<3x3xf32>
    %31 = arith.mulf %26, %30 : vector<3x3xf32>
    %32 = vector.extract_strided_slice %14 {offsets = [0, 0], sizes = [3, 8], strides = [1, 1]} : vector<3x32xf32> to vector<3x8xf32>
    %cst_17 = arith.constant dense<0.000000e+00> : vector<3x8xf32>
    %33 = tpu.matmul %31, %32, %cst_17 {dimension_numbers = #tpu.dot_dimension_numbers<[1], [0], [0], [1], [0, 0, 1, 1], [], []>} : vector<3x3xf32>, vector<3x8xf32>, vector<3x8xf32> -> vector<3x8xf32>
    %34 = vector.extract_strided_slice %15 {offsets = [0, 0], sizes = [8, 32], strides = [1, 1]} : vector<32x32xf32> to vector<8x32xf32>
    %cst_18 = arith.constant dense<0.000000e+00> : vector<3x32xf32>
    %35 = tpu.matmul %33, %34, %cst_18 {dimension_numbers = #tpu.dot_dimension_numbers<[1], [0], [0], [1], [0, 0, 1, 1], [], []>} : vector<3x8xf32>, vector<8x32xf32>, vector<3x32xf32> -> vector<3x32xf32>
    %36 = vector.extract_strided_slice %12 {offsets = [0, 8], sizes = [3, 8], strides = [1, 1]} : vector<3x32xf32> to vector<3x8xf32>
    %37 = vector.extract_strided_slice %13 {offsets = [0, 8], sizes = [3, 8], strides = [1, 1]} : vector<3x32xf32> to vector<3x8xf32>
    %cst_19 = arith.constant dense<0.000000e+00> : vector<3x3xf32>
    %38 = tpu.matmul %36, %37, %cst_19 {dimension_numbers = #tpu.dot_dimension_numbers<[1], [1], [0], [0], [0, 0, 1, 0], [], []>} : vector<3x8xf32>, vector<3x8xf32>, vector<3x3xf32> -> vector<3x3xf32>
    %cst_20 = arith.constant -1.000000e+30 : f32
    %39 = vector.broadcast %cst_20 : f32 to vector<3x3xf32>
    %40 = arith.select %6, %38, %39 : vector<3x3xi1>, vector<3x3xf32>
    %cst_21 = arith.constant dense<0xFF800000> : vector<3xf32>
    %41 = vector.multi_reduction <maximumf>, %40, %cst_21 [1] : vector<3x3xf32> to vector<3xf32>
    %42 = vector.shape_cast %41 : vector<3xf32> to vector<3x1xf32>
    %43 = vector.broadcast %42 : vector<3x1xf32> to vector<3x3xf32>
    %44 = arith.subf %40, %43 : vector<3x3xf32>
    %45 = math.exp %44 : vector<3x3xf32>
    %cst_22 = arith.constant dense<0.000000e+00> : vector<3xf32>
    %46 = vector.multi_reduction <add>, %45, %cst_22 [1] : vector<3x3xf32> to vector<3xf32>
    %47 = vector.shape_cast %46 : vector<3xf32> to vector<3x1xf32>
    %48 = tpu.reciprocal %47 {approx = true} : vector<3x1xf32> -> vector<3x1xf32>
    %49 = vector.broadcast %48 : vector<3x1xf32> to vector<3x3xf32>
    %50 = arith.mulf %45, %49 : vector<3x3xf32>
    %51 = vector.extract_strided_slice %14 {offsets = [0, 8], sizes = [3, 8], strides = [1, 1]} : vector<3x32xf32> to vector<3x8xf32>
    %cst_23 = arith.constant dense<0.000000e+00> : vector<3x8xf32>
    %52 = tpu.matmul %50, %51, %cst_23 {dimension_numbers = #tpu.dot_dimension_numbers<[1], [0], [0], [1], [0, 0, 1, 1], [], []>} : vector<3x3xf32>, vector<3x8xf32>, vector<3x8xf32> -> vector<3x8xf32>
    %53 = vector.extract_strided_slice %15 {offsets = [8, 0], sizes = [8, 32], strides = [1, 1]} : vector<32x32xf32> to vector<8x32xf32>
    %cst_24 = arith.constant dense<0.000000e+00> : vector<3x32xf32>
    %54 = tpu.matmul %52, %53, %cst_24 {dimension_numbers = #tpu.dot_dimension_numbers<[1], [0], [0], [1], [0, 0, 1, 1], [], []>} : vector<3x8xf32>, vector<8x32xf32>, vector<3x32xf32> -> vector<3x32xf32>
    %55 = arith.addf %35, %54 : vector<3x32xf32>
    %56 = vector.extract_strided_slice %12 {offsets = [0, 16], sizes = [3, 8], strides = [1, 1]} : vector<3x32xf32> to vector<3x8xf32>
    %57 = vector.extract_strided_slice %13 {offsets = [0, 16], sizes = [3, 8], strides = [1, 1]} : vector<3x32xf32> to vector<3x8xf32>
    %cst_25 = arith.constant dense<0.000000e+00> : vector<3x3xf32>
    %58 = tpu.matmul %56, %57, %cst_25 {dimension_numbers = #tpu.dot_dimension_numbers<[1], [1], [0], [0], [0, 0, 1, 0], [], []>} : vector<3x8xf32>, vector<3x8xf32>, vector<3x3xf32> -> vector<3x3xf32>
    %cst_26 = arith.constant -1.000000e+30 : f32
    %59 = vector.broadcast %cst_26 : f32 to vector<3x3xf32>
    %60 = arith.select %6, %58, %59 : vector<3x3xi1>, vector<3x3xf32>
    %cst_27 = arith.constant dense<0xFF800000> : vector<3xf32>
    %61 = vector.multi_reduction <maximumf>, %60, %cst_27 [1] : vector<3x3xf32> to vector<3xf32>
    %62 = vector.shape_cast %61 : vector<3xf32> to vector<3x1xf32>
    %63 = vector.broadcast %62 : vector<3x1xf32> to vector<3x3xf32>
    %64 = arith.subf %60, %63 : vector<3x3xf32>
    %65 = math.exp %64 : vector<3x3xf32>
    %cst_28 = arith.constant dense<0.000000e+00> : vector<3xf32>
    %66 = vector.multi_reduction <add>, %65, %cst_28 [1] : vector<3x3xf32> to vector<3xf32>
    %67 = vector.shape_cast %66 : vector<3xf32> to vector<3x1xf32>
    %68 = tpu.reciprocal %67 {approx = true} : vector<3x1xf32> -> vector<3x1xf32>
    %69 = vector.broadcast %68 : vector<3x1xf32> to vector<3x3xf32>
    %70 = arith.mulf %65, %69 : vector<3x3xf32>
    %71 = vector.extract_strided_slice %14 {offsets = [0, 16], sizes = [3, 8], strides = [1, 1]} : vector<3x32xf32> to vector<3x8xf32>
    %cst_29 = arith.constant dense<0.000000e+00> : vector<3x8xf32>
    %72 = tpu.matmul %70, %71, %cst_29 {dimension_numbers = #tpu.dot_dimension_numbers<[1], [0], [0], [1], [0, 0, 1, 1], [], []>} : vector<3x3xf32>, vector<3x8xf32>, vector<3x8xf32> -> vector<3x8xf32>
    %73 = vector.extract_strided_slice %15 {offsets = [16, 0], sizes = [8, 32], strides = [1, 1]} : vector<32x32xf32> to vector<8x32xf32>
    %cst_30 = arith.constant dense<0.000000e+00> : vector<3x32xf32>
    %74 = tpu.matmul %72, %73, %cst_30 {dimension_numbers = #tpu.dot_dimension_numbers<[1], [0], [0], [1], [0, 0, 1, 1], [], []>} : vector<3x8xf32>, vector<8x32xf32>, vector<3x32xf32> -> vector<3x32xf32>
    %75 = arith.addf %55, %74 : vector<3x32xf32>
    %76 = vector.extract_strided_slice %12 {offsets = [0, 24], sizes = [3, 8], strides = [1, 1]} : vector<3x32xf32> to vector<3x8xf32>
    %77 = vector.extract_strided_slice %13 {offsets = [0, 24], sizes = [3, 8], strides = [1, 1]} : vector<3x32xf32> to vector<3x8xf32>
    %cst_31 = arith.constant dense<0.000000e+00> : vector<3x3xf32>
    %78 = tpu.matmul %76, %77, %cst_31 {dimension_numbers = #tpu.dot_dimension_numbers<[1], [1], [0], [0], [0, 0, 1, 0], [], []>} : vector<3x8xf32>, vector<3x8xf32>, vector<3x3xf32> -> vector<3x3xf32>
    %cst_32 = arith.constant -1.000000e+30 : f32
    %79 = vector.broadcast %cst_32 : f32 to vector<3x3xf32>
    %80 = arith.select %6, %78, %79 : vector<3x3xi1>, vector<3x3xf32>
    %cst_33 = arith.constant dense<0xFF800000> : vector<3xf32>
    %81 = vector.multi_reduction <maximumf>, %80, %cst_33 [1] : vector<3x3xf32> to vector<3xf32>
    %82 = vector.shape_cast %81 : vector<3xf32> to vector<3x1xf32>
    %83 = vector.broadcast %82 : vector<3x1xf32> to vector<3x3xf32>
    %84 = arith.subf %80, %83 : vector<3x3xf32>
    %85 = math.exp %84 : vector<3x3xf32>
    %cst_34 = arith.constant dense<0.000000e+00> : vector<3xf32>
    %86 = vector.multi_reduction <add>, %85, %cst_34 [1] : vector<3x3xf32> to vector<3xf32>
    %87 = vector.shape_cast %86 : vector<3xf32> to vector<3x1xf32>
    %88 = tpu.reciprocal %87 {approx = true} : vector<3x1xf32> -> vector<3x1xf32>
    %89 = vector.broadcast %88 : vector<3x1xf32> to vector<3x3xf32>
    %90 = arith.mulf %85, %89 : vector<3x3xf32>
    %91 = vector.extract_strided_slice %14 {offsets = [0, 24], sizes = [3, 8], strides = [1, 1]} : vector<3x32xf32> to vector<3x8xf32>
    %cst_35 = arith.constant dense<0.000000e+00> : vector<3x8xf32>
    %92 = tpu.matmul %90, %91, %cst_35 {dimension_numbers = #tpu.dot_dimension_numbers<[1], [0], [0], [1], [0, 0, 1, 1], [], []>} : vector<3x3xf32>, vector<3x8xf32>, vector<3x8xf32> -> vector<3x8xf32>
    %93 = vector.extract_strided_slice %15 {offsets = [24, 0], sizes = [8, 32], strides = [1, 1]} : vector<32x32xf32> to vector<8x32xf32>
    %cst_36 = arith.constant dense<0.000000e+00> : vector<3x32xf32>
    %94 = tpu.matmul %92, %93, %cst_36 {dimension_numbers = #tpu.dot_dimension_numbers<[1], [0], [0], [1], [0, 0, 1, 1], [], []>} : vector<3x8xf32>, vector<8x32xf32>, vector<3x32xf32> -> vector<3x32xf32>
    %95 = arith.addf %75, %94 : vector<3x32xf32>
    %96 = vector.broadcast %16 : vector<1x32xf32> to vector<3x32xf32>
    %97 = arith.addf %95, %96 : vector<3x32xf32>
    %98 = arith.addf %1, %97 : vector<3x32xf32>
    %c0_37 = arith.constant 0 : index
    %c0_38 = arith.constant 0 : index
    %99 = vector.load %arg13[%c0_37, %c0_38] : memref<1x32xf32, #tpu.memory_space<vmem>>, vector<1x32xf32>
    %c0_39 = arith.constant 0 : index
    %c0_40 = arith.constant 0 : index
    %100 = vector.load %arg14[%c0_39, %c0_40] : memref<1x32xf32, #tpu.memory_space<vmem>>, vector<1x32xf32>
    %cst_41 = arith.constant dense<0.000000e+00> : vector<3xf32>
    %101 = vector.multi_reduction <add>, %98, %cst_41 [1] : vector<3x32xf32> to vector<3xf32>
    %102 = vector.shape_cast %101 : vector<3xf32> to vector<3x1xf32>
    %cst_42 = arith.constant 3.200000e+01 : f32
    %103 = vector.broadcast %cst_42 : f32 to vector<3x1xf32>
    %104 = arith.divf %102, %103 : vector<3x1xf32>
    %105 = vector.broadcast %104 : vector<3x1xf32> to vector<3x32xf32>
    %106 = arith.subf %98, %105 : vector<3x32xf32>
    %107 = arith.mulf %106, %106 : vector<3x32xf32>
    %cst_43 = arith.constant dense<0.000000e+00> : vector<3xf32>
    %108 = vector.multi_reduction <add>, %107, %cst_43 [1] : vector<3x32xf32> to vector<3xf32>
    %109 = vector.shape_cast %108 : vector<3xf32> to vector<3x1xf32>
    %cst_44 = arith.constant 3.200000e+01 : f32
    %110 = vector.broadcast %cst_44 : f32 to vector<3x1xf32>
    %111 = arith.divf %109, %110 : vector<3x1xf32>
    %cst_45 = arith.constant 9.99999974E-6 : f32
    %112 = vector.broadcast %cst_45 : f32 to vector<3x1xf32>
    %113 = arith.addf %111, %112 : vector<3x1xf32>
    %114 = math.rsqrt %113 : vector<3x1xf32>
    %115 = vector.broadcast %114 : vector<3x1xf32> to vector<3x32xf32>
    %116 = arith.mulf %106, %115 : vector<3x32xf32>
    %117 = vector.broadcast %99 : vector<1x32xf32> to vector<3x32xf32>
    %118 = arith.mulf %116, %117 : vector<3x32xf32>
    %119 = vector.broadcast %100 : vector<1x32xf32> to vector<3x32xf32>
    %120 = arith.addf %118, %119 : vector<3x32xf32>
    %c0_46 = arith.constant 0 : index
    %c0_47 = arith.constant 0 : index
    %121 = vector.load %arg7[%c0_46, %c0_47] : memref<32x64xf32, #tpu.memory_space<vmem>>, vector<32x64xf32>
    %cst_48 = arith.constant dense<0.000000e+00> : vector<3x64xf32>
    %122 = tpu.matmul %120, %121, %cst_48 {dimension_numbers = #tpu.dot_dimension_numbers<[1], [0], [0], [1], [0, 0, 1, 1], [], []>} : vector<3x32xf32>, vector<32x64xf32>, vector<3x64xf32> -> vector<3x64xf32>
    %c0_49 = arith.constant 0 : index
    %c0_50 = arith.constant 0 : index
    %123 = vector.load %arg8[%c0_49, %c0_50] : memref<1x64xf32, #tpu.memory_space<vmem>>, vector<1x64xf32>
    %124 = vector.broadcast %123 : vector<1x64xf32> to vector<3x64xf32>
    %125 = arith.addf %122, %124 : vector<3x64xf32>
    %c0_51 = arith.constant 0 : index
    %c0_52 = arith.constant 0 : index
    %126 = vector.load %arg9[%c0_51, %c0_52] : memref<32x32xf32, #tpu.memory_space<vmem>>, vector<32x32xf32>
    %cst_53 = arith.constant dense<0.000000e+00> : vector<3x32xf32>
    %127 = tpu.matmul %3, %126, %cst_53 {dimension_numbers = #tpu.dot_dimension_numbers<[1], [0], [0], [1], [0, 0, 1, 1], [], []>} : vector<3x32xf32>, vector<32x32xf32>, vector<3x32xf32> -> vector<3x32xf32>
    %c0_54 = arith.constant 0 : index
    %c0_55 = arith.constant 0 : index
    %128 = vector.load %arg10[%c0_54, %c0_55] : memref<1x32xf32, #tpu.memory_space<vmem>>, vector<1x32xf32>
    %129 = vector.broadcast %128 : vector<1x32xf32> to vector<3x32xf32>
    %130 = arith.addf %127, %129 : vector<3x32xf32>
    %131 = vector.extract_strided_slice %125 {offsets = [0, 0], sizes = [3, 32], strides = [1, 1]} : vector<3x64xf32> to vector<3x32xf32>
    %132 = vector.extract_strided_slice %125 {offsets = [0, 32], sizes = [3, 32], strides = [1, 1]} : vector<3x64xf32> to vector<3x32xf32>
    %c0_56 = arith.constant 0 : index
    %c0_57 = arith.constant 0 : index
    %133 = vector.load %arg11[%c0_56, %c0_57] : memref<32x32xf32, #tpu.memory_space<vmem>>, vector<32x32xf32>
    %c0_58 = arith.constant 0 : index
    %c0_59 = arith.constant 0 : index
    %134 = vector.load %arg12[%c0_58, %c0_59] : memref<1x32xf32, #tpu.memory_space<vmem>>, vector<1x32xf32>
    %135 = vector.extract_strided_slice %130 {offsets = [0, 0], sizes = [3, 8], strides = [1, 1]} : vector<3x32xf32> to vector<3x8xf32>
    %136 = vector.extract_strided_slice %131 {offsets = [0, 0], sizes = [3, 8], strides = [1, 1]} : vector<3x32xf32> to vector<3x8xf32>
    %cst_60 = arith.constant dense<0.000000e+00> : vector<3x3xf32>
    %137 = tpu.matmul %135, %136, %cst_60 {dimension_numbers = #tpu.dot_dimension_numbers<[1], [1], [0], [0], [0, 0, 1, 0], [], []>} : vector<3x8xf32>, vector<3x8xf32>, vector<3x3xf32> -> vector<3x3xf32>
    %cst_61 = arith.constant -1.000000e+30 : f32
    %138 = vector.broadcast %cst_61 : f32 to vector<3x3xf32>
    %139 = arith.select %6, %137, %138 : vector<3x3xi1>, vector<3x3xf32>
    %cst_62 = arith.constant dense<0xFF800000> : vector<3xf32>
    %140 = vector.multi_reduction <maximumf>, %139, %cst_62 [1] : vector<3x3xf32> to vector<3xf32>
    %141 = vector.shape_cast %140 : vector<3xf32> to vector<3x1xf32>
    %142 = vector.broadcast %141 : vector<3x1xf32> to vector<3x3xf32>
    %143 = arith.subf %139, %142 : vector<3x3xf32>
    %144 = math.exp %143 : vector<3x3xf32>
    %cst_63 = arith.constant dense<0.000000e+00> : vector<3xf32>
    %145 = vector.multi_reduction <add>, %144, %cst_63 [1] : vector<3x3xf32> to vector<3xf32>
    %146 = vector.shape_cast %145 : vector<3xf32> to vector<3x1xf32>
    %147 = tpu.reciprocal %146 {approx = true} : vector<3x1xf32> -> vector<3x1xf32>
    %148 = vector.broadcast %147 : vector<3x1xf32> to vector<3x3xf32>
    %149 = arith.mulf %144, %148 : vector<3x3xf32>
    %150 = vector.extract_strided_slice %132 {offsets = [0, 0], sizes = [3, 8], strides = [1, 1]} : vector<3x32xf32> to vector<3x8xf32>
    %cst_64 = arith.constant dense<0.000000e+00> : vector<3x8xf32>
    %151 = tpu.matmul %149, %150, %cst_64 {dimension_numbers = #tpu.dot_dimension_numbers<[1], [0], [0], [1], [0, 0, 1, 1], [], []>} : vector<3x3xf32>, vector<3x8xf32>, vector<3x8xf32> -> vector<3x8xf32>
    %152 = vector.extract_strided_slice %133 {offsets = [0, 0], sizes = [8, 32], strides = [1, 1]} : vector<32x32xf32> to vector<8x32xf32>
    %cst_65 = arith.constant dense<0.000000e+00> : vector<3x32xf32>
    %153 = tpu.matmul %151, %152, %cst_65 {dimension_numbers = #tpu.dot_dimension_numbers<[1], [0], [0], [1], [0, 0, 1, 1], [], []>} : vector<3x8xf32>, vector<8x32xf32>, vector<3x32xf32> -> vector<3x32xf32>
    %154 = vector.extract_strided_slice %130 {offsets = [0, 8], sizes = [3, 8], strides = [1, 1]} : vector<3x32xf32> to vector<3x8xf32>
    %155 = vector.extract_strided_slice %131 {offsets = [0, 8], sizes = [3, 8], strides = [1, 1]} : vector<3x32xf32> to vector<3x8xf32>
    %cst_66 = arith.constant dense<0.000000e+00> : vector<3x3xf32>
    %156 = tpu.matmul %154, %155, %cst_66 {dimension_numbers = #tpu.dot_dimension_numbers<[1], [1], [0], [0], [0, 0, 1, 0], [], []>} : vector<3x8xf32>, vector<3x8xf32>, vector<3x3xf32> -> vector<3x3xf32>
    %cst_67 = arith.constant -1.000000e+30 : f32
    %157 = vector.broadcast %cst_67 : f32 to vector<3x3xf32>
    %158 = arith.select %6, %156, %157 : vector<3x3xi1>, vector<3x3xf32>
    %cst_68 = arith.constant dense<0xFF800000> : vector<3xf32>
    %159 = vector.multi_reduction <maximumf>, %158, %cst_68 [1] : vector<3x3xf32> to vector<3xf32>
    %160 = vector.shape_cast %159 : vector<3xf32> to vector<3x1xf32>
    %161 = vector.broadcast %160 : vector<3x1xf32> to vector<3x3xf32>
    %162 = arith.subf %158, %161 : vector<3x3xf32>
    %163 = math.exp %162 : vector<3x3xf32>
    %cst_69 = arith.constant dense<0.000000e+00> : vector<3xf32>
    %164 = vector.multi_reduction <add>, %163, %cst_69 [1] : vector<3x3xf32> to vector<3xf32>
    %165 = vector.shape_cast %164 : vector<3xf32> to vector<3x1xf32>
    %166 = tpu.reciprocal %165 {approx = true} : vector<3x1xf32> -> vector<3x1xf32>
    %167 = vector.broadcast %166 : vector<3x1xf32> to vector<3x3xf32>
    %168 = arith.mulf %163, %167 : vector<3x3xf32>
    %169 = vector.extract_strided_slice %132 {offsets = [0, 8], sizes = [3, 8], strides = [1, 1]} : vector<3x32xf32> to vector<3x8xf32>
    %cst_70 = arith.constant dense<0.000000e+00> : vector<3x8xf32>
    %170 = tpu.matmul %168, %169, %cst_70 {dimension_numbers = #tpu.dot_dimension_numbers<[1], [0], [0], [1], [0, 0, 1, 1], [], []>} : vector<3x3xf32>, vector<3x8xf32>, vector<3x8xf32> -> vector<3x8xf32>
    %171 = vector.extract_strided_slice %133 {offsets = [8, 0], sizes = [8, 32], strides = [1, 1]} : vector<32x32xf32> to vector<8x32xf32>
    %cst_71 = arith.constant dense<0.000000e+00> : vector<3x32xf32>
    %172 = tpu.matmul %170, %171, %cst_71 {dimension_numbers = #tpu.dot_dimension_numbers<[1], [0], [0], [1], [0, 0, 1, 1], [], []>} : vector<3x8xf32>, vector<8x32xf32>, vector<3x32xf32> -> vector<3x32xf32>
    %173 = arith.addf %153, %172 : vector<3x32xf32>
    %174 = vector.extract_strided_slice %130 {offsets = [0, 16], sizes = [3, 8], strides = [1, 1]} : vector<3x32xf32> to vector<3x8xf32>
    %175 = vector.extract_strided_slice %131 {offsets = [0, 16], sizes = [3, 8], strides = [1, 1]} : vector<3x32xf32> to vector<3x8xf32>
    %cst_72 = arith.constant dense<0.000000e+00> : vector<3x3xf32>
    %176 = tpu.matmul %174, %175, %cst_72 {dimension_numbers = #tpu.dot_dimension_numbers<[1], [1], [0], [0], [0, 0, 1, 0], [], []>} : vector<3x8xf32>, vector<3x8xf32>, vector<3x3xf32> -> vector<3x3xf32>
    %cst_73 = arith.constant -1.000000e+30 : f32
    %177 = vector.broadcast %cst_73 : f32 to vector<3x3xf32>
    %178 = arith.select %6, %176, %177 : vector<3x3xi1>, vector<3x3xf32>
    %cst_74 = arith.constant dense<0xFF800000> : vector<3xf32>
    %179 = vector.multi_reduction <maximumf>, %178, %cst_74 [1] : vector<3x3xf32> to vector<3xf32>
    %180 = vector.shape_cast %179 : vector<3xf32> to vector<3x1xf32>
    %181 = vector.broadcast %180 : vector<3x1xf32> to vector<3x3xf32>
    %182 = arith.subf %178, %181 : vector<3x3xf32>
    %183 = math.exp %182 : vector<3x3xf32>
    %cst_75 = arith.constant dense<0.000000e+00> : vector<3xf32>
    %184 = vector.multi_reduction <add>, %183, %cst_75 [1] : vector<3x3xf32> to vector<3xf32>
    %185 = vector.shape_cast %184 : vector<3xf32> to vector<3x1xf32>
    %186 = tpu.reciprocal %185 {approx = true} : vector<3x1xf32> -> vector<3x1xf32>
    %187 = vector.broadcast %186 : vector<3x1xf32> to vector<3x3xf32>
    %188 = arith.mulf %183, %187 : vector<3x3xf32>
    %189 = vector.extract_strided_slice %132 {offsets = [0, 16], sizes = [3, 8], strides = [1, 1]} : vector<3x32xf32> to vector<3x8xf32>
    %cst_76 = arith.constant dense<0.000000e+00> : vector<3x8xf32>
    %190 = tpu.matmul %188, %189, %cst_76 {dimension_numbers = #tpu.dot_dimension_numbers<[1], [0], [0], [1], [0, 0, 1, 1], [], []>} : vector<3x3xf32>, vector<3x8xf32>, vector<3x8xf32> -> vector<3x8xf32>
    %191 = vector.extract_strided_slice %133 {offsets = [16, 0], sizes = [8, 32], strides = [1, 1]} : vector<32x32xf32> to vector<8x32xf32>
    %cst_77 = arith.constant dense<0.000000e+00> : vector<3x32xf32>
    %192 = tpu.matmul %190, %191, %cst_77 {dimension_numbers = #tpu.dot_dimension_numbers<[1], [0], [0], [1], [0, 0, 1, 1], [], []>} : vector<3x8xf32>, vector<8x32xf32>, vector<3x32xf32> -> vector<3x32xf32>
    %193 = arith.addf %173, %192 : vector<3x32xf32>
    %194 = vector.extract_strided_slice %130 {offsets = [0, 24], sizes = [3, 8], strides = [1, 1]} : vector<3x32xf32> to vector<3x8xf32>
    %195 = vector.extract_strided_slice %131 {offsets = [0, 24], sizes = [3, 8], strides = [1, 1]} : vector<3x32xf32> to vector<3x8xf32>
    %cst_78 = arith.constant dense<0.000000e+00> : vector<3x3xf32>
    %196 = tpu.matmul %194, %195, %cst_78 {dimension_numbers = #tpu.dot_dimension_numbers<[1], [1], [0], [0], [0, 0, 1, 0], [], []>} : vector<3x8xf32>, vector<3x8xf32>, vector<3x3xf32> -> vector<3x3xf32>
    %cst_79 = arith.constant -1.000000e+30 : f32
    %197 = vector.broadcast %cst_79 : f32 to vector<3x3xf32>
    %198 = arith.select %6, %196, %197 : vector<3x3xi1>, vector<3x3xf32>
    %cst_80 = arith.constant dense<0xFF800000> : vector<3xf32>
    %199 = vector.multi_reduction <maximumf>, %198, %cst_80 [1] : vector<3x3xf32> to vector<3xf32>
    %200 = vector.shape_cast %199 : vector<3xf32> to vector<3x1xf32>
    %201 = vector.broadcast %200 : vector<3x1xf32> to vector<3x3xf32>
    %202 = arith.subf %198, %201 : vector<3x3xf32>
    %203 = math.exp %202 : vector<3x3xf32>
    %cst_81 = arith.constant dense<0.000000e+00> : vector<3xf32>
    %204 = vector.multi_reduction <add>, %203, %cst_81 [1] : vector<3x3xf32> to vector<3xf32>
    %205 = vector.shape_cast %204 : vector<3xf32> to vector<3x1xf32>
    %206 = tpu.reciprocal %205 {approx = true} : vector<3x1xf32> -> vector<3x1xf32>
    %207 = vector.broadcast %206 : vector<3x1xf32> to vector<3x3xf32>
    %208 = arith.mulf %203, %207 : vector<3x3xf32>
    %209 = vector.extract_strided_slice %132 {offsets = [0, 24], sizes = [3, 8], strides = [1, 1]} : vector<3x32xf32> to vector<3x8xf32>
    %cst_82 = arith.constant dense<0.000000e+00> : vector<3x8xf32>
    %210 = tpu.matmul %208, %209, %cst_82 {dimension_numbers = #tpu.dot_dimension_numbers<[1], [0], [0], [1], [0, 0, 1, 1], [], []>} : vector<3x3xf32>, vector<3x8xf32>, vector<3x8xf32> -> vector<3x8xf32>
    %211 = vector.extract_strided_slice %133 {offsets = [24, 0], sizes = [8, 32], strides = [1, 1]} : vector<32x32xf32> to vector<8x32xf32>
    %cst_83 = arith.constant dense<0.000000e+00> : vector<3x32xf32>
    %212 = tpu.matmul %210, %211, %cst_83 {dimension_numbers = #tpu.dot_dimension_numbers<[1], [0], [0], [1], [0, 0, 1, 1], [], []>} : vector<3x8xf32>, vector<8x32xf32>, vector<3x32xf32> -> vector<3x32xf32>
    %213 = arith.addf %193, %212 : vector<3x32xf32>
    %214 = vector.broadcast %134 : vector<1x32xf32> to vector<3x32xf32>
    %215 = arith.addf %213, %214 : vector<3x32xf32>
    %216 = arith.addf %3, %215 : vector<3x32xf32>
    %c0_84 = arith.constant 0 : index
    %c0_85 = arith.constant 0 : index
    %217 = vector.load %arg15[%c0_84, %c0_85] : memref<1x32xf32, #tpu.memory_space<vmem>>, vector<1x32xf32>
    %c0_86 = arith.constant 0 : index
    %c0_87 = arith.constant 0 : index
    %218 = vector.load %arg16[%c0_86, %c0_87] : memref<1x32xf32, #tpu.memory_space<vmem>>, vector<1x32xf32>
    %cst_88 = arith.constant dense<0.000000e+00> : vector<3xf32>
    %219 = vector.multi_reduction <add>, %216, %cst_88 [1] : vector<3x32xf32> to vector<3xf32>
    %220 = vector.shape_cast %219 : vector<3xf32> to vector<3x1xf32>
    %cst_89 = arith.constant 3.200000e+01 : f32
    %221 = vector.broadcast %cst_89 : f32 to vector<3x1xf32>
    %222 = arith.divf %220, %221 : vector<3x1xf32>
    %223 = vector.broadcast %222 : vector<3x1xf32> to vector<3x32xf32>
    %224 = arith.subf %216, %223 : vector<3x32xf32>
    %225 = arith.mulf %224, %224 : vector<3x32xf32>
    %cst_90 = arith.constant dense<0.000000e+00> : vector<3xf32>
    %226 = vector.multi_reduction <add>, %225, %cst_90 [1] : vector<3x32xf32> to vector<3xf32>
    %227 = vector.shape_cast %226 : vector<3xf32> to vector<3x1xf32>
    %cst_91 = arith.constant 3.200000e+01 : f32
    %228 = vector.broadcast %cst_91 : f32 to vector<3x1xf32>
    %229 = arith.divf %227, %228 : vector<3x1xf32>
    %cst_92 = arith.constant 9.99999974E-6 : f32
    %230 = vector.broadcast %cst_92 : f32 to vector<3x1xf32>
    %231 = arith.addf %229, %230 : vector<3x1xf32>
    %232 = math.rsqrt %231 : vector<3x1xf32>
    %233 = vector.broadcast %232 : vector<3x1xf32> to vector<3x32xf32>
    %234 = arith.mulf %224, %233 : vector<3x32xf32>
    %235 = vector.broadcast %217 : vector<1x32xf32> to vector<3x32xf32>
    %236 = arith.mulf %234, %235 : vector<3x32xf32>
    %237 = vector.broadcast %218 : vector<1x32xf32> to vector<3x32xf32>
    %238 = arith.addf %236, %237 : vector<3x32xf32>
    %c0_93 = arith.constant 0 : index
    %c0_94 = arith.constant 0 : index
    %239 = vector.load %arg19[%c0_93, %c0_94] : memref<32x32xf32, #tpu.memory_space<vmem>>, vector<32x32xf32>
    %cst_95 = arith.constant dense<0.000000e+00> : vector<3x32xf32>
    %240 = tpu.matmul %238, %239, %cst_95 {dimension_numbers = #tpu.dot_dimension_numbers<[1], [0], [0], [1], [0, 0, 1, 1], [], []>} : vector<3x32xf32>, vector<32x32xf32>, vector<3x32xf32> -> vector<3x32xf32>
    %c0_96 = arith.constant 0 : index
    %c0_97 = arith.constant 0 : index
    %241 = vector.load %arg20[%c0_96, %c0_97] : memref<1x32xf32, #tpu.memory_space<vmem>>, vector<1x32xf32>
    %242 = vector.broadcast %241 : vector<1x32xf32> to vector<3x32xf32>
    %243 = arith.addf %240, %242 : vector<3x32xf32>
    %244 = arith.mulf %243, %243 : vector<3x32xf32>
    %245 = arith.mulf %243, %244 : vector<3x32xf32>
    %cst_98 = arith.constant 4.471500e-02 : f32
    %246 = vector.broadcast %cst_98 : f32 to vector<3x32xf32>
    %247 = arith.mulf %246, %245 : vector<3x32xf32>
    %248 = arith.addf %243, %247 : vector<3x32xf32>
    %cst_99 = arith.constant 0.797884583 : f32
    %249 = vector.broadcast %cst_99 : f32 to vector<3x32xf32>
    %250 = arith.mulf %249, %248 : vector<3x32xf32>
    %251 = math.tanh %250 : vector<3x32xf32>
    %cst_100 = arith.constant 1.000000e+00 : f32
    %252 = vector.broadcast %cst_100 : f32 to vector<3x32xf32>
    %253 = arith.addf %252, %251 : vector<3x32xf32>
    %cst_101 = arith.constant 5.000000e-01 : f32
    %254 = vector.broadcast %cst_101 : f32 to vector<3x32xf32>
    %255 = arith.mulf %254, %253 : vector<3x32xf32>
    %256 = arith.mulf %243, %255 : vector<3x32xf32>
    %c0_102 = arith.constant 0 : index
    %c0_103 = arith.constant 0 : index
    %257 = vector.load %arg21[%c0_102, %c0_103] : memref<32x32xf32, #tpu.memory_space<vmem>>, vector<32x32xf32>
    %cst_104 = arith.constant dense<0.000000e+00> : vector<3x32xf32>
    %258 = tpu.matmul %256, %257, %cst_104 {dimension_numbers = #tpu.dot_dimension_numbers<[1], [0], [0], [1], [0, 0, 1, 1], [], []>} : vector<3x32xf32>, vector<32x32xf32>, vector<3x32xf32> -> vector<3x32xf32>
    %c0_105 = arith.constant 0 : index
    %c0_106 = arith.constant 0 : index
    %259 = vector.load %arg22[%c0_105, %c0_106] : memref<1x32xf32, #tpu.memory_space<vmem>>, vector<1x32xf32>
    %260 = vector.broadcast %259 : vector<1x32xf32> to vector<3x32xf32>
    %261 = arith.addf %258, %260 : vector<3x32xf32>
    %262 = arith.addf %238, %261 : vector<3x32xf32>
    %c0_107 = arith.constant 0 : index
    %c0_108 = arith.constant 0 : index
    %263 = vector.load %arg17[%c0_107, %c0_108] : memref<1x32xf32, #tpu.memory_space<vmem>>, vector<1x32xf32>
    %c0_109 = arith.constant 0 : index
    %c0_110 = arith.constant 0 : index
    %264 = vector.load %arg18[%c0_109, %c0_110] : memref<1x32xf32, #tpu.memory_space<vmem>>, vector<1x32xf32>
    %cst_111 = arith.constant dense<0.000000e+00> : vector<3xf32>
    %265 = vector.multi_reduction <add>, %262, %cst_111 [1] : vector<3x32xf32> to vector<3xf32>
    %266 = vector.shape_cast %265 : vector<3xf32> to vector<3x1xf32>
    %cst_112 = arith.constant 3.200000e+01 : f32
    %267 = vector.broadcast %cst_112 : f32 to vector<3x1xf32>
    %268 = arith.divf %266, %267 : vector<3x1xf32>
    %269 = vector.broadcast %268 : vector<3x1xf32> to vector<3x32xf32>
    %270 = arith.subf %262, %269 : vector<3x32xf32>
    %271 = arith.mulf %270, %270 : vector<3x32xf32>
    %cst_113 = arith.constant dense<0.000000e+00> : vector<3xf32>
    %272 = vector.multi_reduction <add>, %271, %cst_113 [1] : vector<3x32xf32> to vector<3xf32>
    %273 = vector.shape_cast %272 : vector<3xf32> to vector<3x1xf32>
    %cst_114 = arith.constant 3.200000e+01 : f32
    %274 = vector.broadcast %cst_114 : f32 to vector<3x1xf32>
    %275 = arith.divf %273, %274 : vector<3x1xf32>
    %cst_115 = arith.constant 9.99999974E-6 : f32
    %276 = vector.broadcast %cst_115 : f32 to vector<3x1xf32>
    %277 = arith.addf %275, %276 : vector<3x1xf32>
    %278 = math.rsqrt %277 : vector<3x1xf32>
    %279 = vector.broadcast %278 : vector<3x1xf32> to vector<3x32xf32>
    %280 = arith.mulf %270, %279 : vector<3x32xf32>
    %281 = vector.broadcast %263 : vector<1x32xf32> to vector<3x32xf32>
    %282 = arith.mulf %280, %281 : vector<3x32xf32>
    %283 = vector.broadcast %264 : vector<1x32xf32> to vector<3x32xf32>
    %284 = arith.addf %282, %283 : vector<3x32xf32>
    %c0_116 = arith.constant 0 : index
    %c0_117 = arith.constant 0 : index
    %c0_118 = arith.constant 0 : index
    %285 = vector.load %arg23[%c0_116, %c0_117, %c0_118] : memref<1x3x32xf32, #tpu.memory_space<vmem>>, vector<1x3x32xf32>
    %286 = vector.shape_cast %285 : vector<1x3x32xf32> to vector<3x32xf32>
    %287 = vector.shape_cast %284 : vector<3x32xf32> to vector<1x3x32xf32>
    tpu.vector_store %arg23[%c0_116, %c0_117, %c0_118], %287 {strides = array<i32>} : memref<1x3x32xf32, #tpu.memory_space<vmem>>, vector<1x3x32xf32>,
    return
  }
  func.func @transform_0(%arg0: i32) -> (i32, i32, i32) {
    %c0_i32 = arith.constant 0 : i32
    %c0_i32_0 = arith.constant 0 : i32
    %c0_i32_1 = arith.constant 0 : i32
    return %arg0, %c0_i32, %c0_i32_0 : i32, i32, i32
  }
  func.func @transform_1(%arg0: i32) -> (i32, i32, i32) {
    %c0_i32 = arith.constant 0 : i32
    %c0_i32_0 = arith.constant 0 : i32
    %c0_i32_1 = arith.constant 0 : i32
    return %arg0, %c0_i32, %c0_i32_0 : i32, i32, i32
  }
  func.func @transform_2(%arg0: i32) -> (i32, i32) {
    %c0_i32 = arith.constant 0 : i32
    %c0_i32_0 = arith.constant 0 : i32
    %c0_i32_1 = arith.constant 0 : i32
    return %c0_i32, %c0_i32_0 : i32, i32
  }
  func.func @transform_3(%arg0: i32) -> (i32, i32) {
    %c0_i32 = arith.constant 0 : i32
    %c0_i32_0 = arith.constant 0 : i32
    %c0_i32_1 = arith.constant 0 : i32
    return %c0_i32, %c0_i32_0 : i32, i32
  }
  func.func @transform_4(%arg0: i32) -> (i32, i32) {
    %c0_i32 = arith.constant 0 : i32
    %c0_i32_0 = arith.constant 0 : i32
    %c0_i32_1 = arith.constant 0 : i32
    return %c0_i32, %c0_i32_0 : i32, i32
  }
  func.func @transform_5(%arg0: i32) -> (i32, i32) {
    %c0_i32 = arith.constant 0 : i32
    %c0_i32_0 = arith.constant 0 : i32
    %c0_i32_1 = arith.constant 0 : i32
    return %c0_i32, %c0_i32_0 : i32, i32
  }
  func.func @transform_6(%arg0: i32) -> (i32, i32) {
    %c0_i32 = arith.constant 0 : i32
    %c0_i32_0 = arith.constant 0 : i32
    %c0_i32_1 = arith.constant 0 : i32
    return %c0_i32, %c0_i32_0 : i32, i32
  }
  func.func @transform_7(%arg0: i32) -> (i32, i32) {
    %c0_i32 = arith.constant 0 : i32
    %c0_i32_0 = arith.constant 0 : i32
    %c0_i32_1 = arith.constant 0 : i32
    return %c0_i32, %c0_i32_0 : i32, i32
  }
  func.func @transform_8(%arg0: i32) -> (i32, i32) {
    %c0_i32 = arith.constant 0 : i32
    %c0_i32_0 = arith.constant 0 : i32
    %c0_i32_1 = arith.constant 0 : i32
    return %c0_i32, %c0_i32_0 : i32, i32
  }
  func.func @transform_9(%arg0: i32) -> (i32, i32) {
    %c0_i32 = arith.constant 0 : i32
    %c0_i32_0 = arith.constant 0 : i32
    %c0_i32_1 = arith.constant 0 : i32
    return %c0_i32, %c0_i32_0 : i32, i32
  }
  func.func @transform_10(%arg0: i32) -> (i32, i32) {
    %c0_i32 = arith.constant 0 : i32
    %c0_i32_0 = arith.constant 0 : i32
    %c0_i32_1 = arith.constant 0 : i32
    return %c0_i32, %c0_i32_0 : i32, i32
  }
  func.func @transform_11(%arg0: i32) -> (i32, i32) {
    %c0_i32 = arith.constant 0 : i32
    %c0_i32_0 = arith.constant 0 : i32
    %c0_i32_1 = arith.constant 0 : i32
    return %c0_i32, %c0_i32_0 : i32, i32
  }
  func.func @transform_12(%arg0: i32) -> (i32, i32) {
    %c0_i32 = arith.constant 0 : i32
    %c0_i32_0 = arith.constant 0 : i32
    %c0_i32_1 = arith.constant 0 : i32
    return %c0_i32, %c0_i32_0 : i32, i32
  }
  func.func @transform_13(%arg0: i32) -> (i32, i32) {
    %c0_i32 = arith.constant 0 : i32
    %c0_i32_0 = arith.constant 0 : i32
    %c0_i32_1 = arith.constant 0 : i32
    return %c0_i32, %c0_i32_0 : i32, i32
  }
  func.func @transform_14(%arg0: i32) -> (i32, i32) {
    %c0_i32 = arith.constant 0 : i32
    %c0_i32_0 = arith.constant 0 : i32
    %c0_i32_1 = arith.constant 0 : i32
    return %c0_i32, %c0_i32_0 : i32, i32
  }
  func.func @transform_15(%arg0: i32) -> (i32, i32) {
    %c0_i32 = arith.constant 0 : i32
    %c0_i32_0 = arith.constant 0 : i32
    %c0_i32_1 = arith.constant 0 : i32
    return %c0_i32, %c0_i32_0 : i32, i32
  }
  func.func @transform_16(%arg0: i32) -> (i32, i32) {
    %c0_i32 = arith.constant 0 : i32
    %c0_i32_0 = arith.constant 0 : i32
    %c0_i32_1 = arith.constant 0 : i32
    return %c0_i32, %c0_i32_0 : i32, i32
  }
  func.func @transform_17(%arg0: i32) -> (i32, i32) {
    %c0_i32 = arith.constant 0 : i32
    %c0_i32_0 = arith.constant 0 : i32
    %c0_i32_1 = arith.constant 0 : i32
    return %c0_i32, %c0_i32_0 : i32, i32
  }
  func.func @transform_18(%arg0: i32) -> (i32, i32) {
    %c0_i32 = arith.constant 0 : i32
    %c0_i32_0 = arith.constant 0 : i32
    %c0_i32_1 = arith.constant 0 : i32
    return %c0_i32, %c0_i32_0 : i32, i32
  }
  func.func @transform_19(%arg0: i32) -> (i32, i32) {
    %c0_i32 = arith.constant 0 : i32
    %c0_i32_0 = arith.constant 0 : i32
    %c0_i32_1 = arith.constant 0 : i32
    return %c0_i32, %c0_i32_0 : i32, i32
  }
  func.func @transform_20(%arg0: i32) -> (i32, i32) {
    %c0_i32 = arith.constant 0 : i32
    %c0_i32_0 = arith.constant 0 : i32
    %c0_i32_1 = arith.constant 0 : i32
    return %c0_i32, %c0_i32_0 : i32, i32
  }
  func.func @transform_21(%arg0: i32) -> (i32, i32) {
    %c0_i32 = arith.constant 0 : i32
    %c0_i32_0 = arith.constant 0 : i32
    %c0_i32_1 = arith.constant 0 : i32
    return %c0_i32, %c0_i32_0 : i32, i32
  }
  func.func @transform_22(%arg0: i32) -> (i32, i32, i32) {
    %c0_i32 = arith.constant 0 : i32
    %c0_i32_0 = arith.constant 0 : i32
    %c0_i32_1 = arith.constant 0 : i32
    return %arg0, %c0_i32, %c0_i32_0 : i32, i32, i32
  }
}

</mosaic_0001>

<bundles_post_ra>
// kernel: tpu_custom_call.1
= control target key start
LH: loop header
LB: loop body
LE: loop exit
PB: predicated region body
PF: predicated region fallthrough
CT: control target
= control target key end

     0   :  { %s5446_s0 = inlined_call_operand.vmem [shape: f32[2,3,32], index: 0, kind: input, shape index: {}]   ;;  %s5447_s1 = inlined_call_operand.vmem [shape: f32[2,3,32], index: 1, kind: input, shape index: {}]   ;;  %s5448_s2 = inlined_call_operand.vmem [shape: f32[32,96], index: 2, kind: input, shape index: {}]   ;;  %s5449_s3 = inlined_call_operand.hbm [shape: f32[1,96], index: 3, kind: input, shape index: {}]   ;;  %s5450_s4 = inlined_call_operand.hbm [shape: f32[32,32], index: 4, kind: input, shape index: {}]   ;;  %s5451_s5 = inlined_call_operand.hbm [shape: f32[1,32], index: 5, kind: input, shape index: {}]   ;;  %s5452_s6 = inlined_call_operand.hbm [shape: f32[32,64], index: 6, kind: input, shape index: {}]   ;;  %s5453_s7 = inlined_call_operand.hbm [shape: f32[1,64], index: 7, kind: input, shape index: {}]   ;;  %s5454_s8 = inlined_call_operand.hbm [shape: f32[32,32], index: 8, kind: input, shape index: {}]   ;;  %s5455_s9 = inlined_call_operand.hbm [shape: f32[1,32], index: 9, kind: input, shape index: {}]   ;;  %s5456_s10 = inlined_call_operand.vmem [shape: f32[32,32], index: 10, kind: input, shape index: {}]   ;;  %s5457_s11 = inlined_call_operand.hbm [shape: f32[1,32], index: 11, kind: input, shape index: {}]   ;;  %s5458_s12 = inlined_call_operand.hbm [shape: f32[1,32], index: 12, kind: input, shape index: {}]   ;;  %s5459_s13 = inlined_call_operand.hbm [shape: f32[1,32], index: 13, kind: input, shape index: {}]   ;;  %s5460_s14 = inlined_call_operand.hbm [shape: f32[1,32], index: 14, kind: input, shape index: {}]   ;;  %s5461_s15 = inlined_call_operand.hbm [shape: f32[1,32], index: 15, kind: input, shape index: {}]   ;;  %s5462_s16 = inlined_call_operand.hbm [shape: f32[1,32], index: 16, kind: input, shape index: {}]   ;;  %s5463_s17 = inlined_call_operand.hbm [shape: f32[1,32], index: 17, kind: input, shape index: {}]   ;;  %s5464_s18 = inlined_call_operand.vmem [shape: f32[32,32], index: 18, kind: input, shape index: {}]   ;;  %s5465_s19 = inlined_call_operand.vmem [shape: f32[1,32], index: 19, kind: input, shape index: {}]   ;;  %s5466_s20 = inlined_call_operand.hbm [shape: f32[32,32], index: 20, kind: input, shape index: {}]   ;;  %s5467_s21 = inlined_call_operand.vmem [shape: f32[1,32], index: 21, kind: input, shape index: {}]   ;;  %s5468_s22 = inlined_call_operand.vmem [shape: f32[2,3,32], index: 22, kind: output, shape index: {}]  }
   0x1   :  { %5483 = sst [smem:[#allocation35_spill]] %s5446_s0 }
   0x2   :  { %5484 = sst [smem:[#allocation36_spill]] %s5447_s1 }
   0x3   :  { %5485 = sst [smem:[#allocation37_spill]] %s5448_s2 }
   0x4   :  { %5486 = sst [smem:[#allocation38_spill]] %s5449_s3 }
   0x5   :  { %5487 = sst [smem:[#allocation39_spill]] %s5450_s4 }
   0x6   :  { %5488 = sst [smem:[#allocation40_spill]] %s5451_s5 }
   0x7   :  { %5489 = sst [smem:[#allocation41_spill]] %s5452_s6 }
   0x8   :  { %5490 = sst [smem:[#allocation42_spill]] %s5456_s10 }
   0x9   :  { %5491 = sst [smem:[#allocation43_spill]] %s5464_s18 }
   0xa   :  { %5492 = sst [smem:[#allocation44_spill]] %s5465_s19 }
   0xb   :  { %5493 = sst [smem:[#allocation45_spill]] %s5467_s21 }
   0xc   :  { %5494 = sst [smem:[#allocation46_spill]] %s5468_s22 }
   0xd   :  { %27 = vsyncpa [#allocation3], 0 }
   0xe   :  { %28 = vsyncpa [#allocation5], 0 }
   0xf   :  { %29 = vsyncpa [#allocation8], 0 }
  0x10   :  { %30 = vsyncpa [#allocation11], 0 }
  0x11   :  { %31 = vsyncpa [#allocation14], 0 }
  0x12   :  { %32 = vsyncpa [#allocation17], 0 }
  0x13   :  { %33 = vsyncpa [#allocation20], 0 }
  0x14   :  { %34 = vsyncpa [#allocation23], 0  ;;  %s4778_s3 = smov 0  }
  0x15 LB: > { %5495 = sst [smem:[#allocation33_spill]] %s4630_s3  ;;  %s4632_s28 = smov [#allocation4]   ;;  %s4630_s3 = sphi %s4778_s3, %s40_s3  }
  0x16   : > { %s569_s29 = sshll.u32 %s4632_s28, 4  ;;  %s4784_s30 = sadd.s32 4294967295, %s4630_s3   ;;  %s4789_s29 = int_to_ptr.vmem [resolvable:$true] %s569_s29 }
  0x17   : > { %5496 = sst [smem:[#allocation34_spill]] %s4784_s30  ;;  %p3583_p0 = scmp.ge.s32.totalorder %s4630_s3, 1 }
  0x18   : > { %p543_p1 = scmp.lt.s32.totalorder %s4630_s3, 3  ;;  %p5479_p2 = scmp.eq.s32.totalorder %s4784_s30, 0 }
  0x19   : > { %s4633_s0 = smov [#allocation7]   ;;  %s4634_s5 = smov [#allocation10]  }
  0x1a   : > { %p4791_p3 = pnand %p3583_p0, %p543_p1  ;;  %s593_s23 = sshll.u32 %s4633_s0, 4  ;;  %s4797_s23 = int_to_ptr.vmem [resolvable:$true] %s593_s23 }
  0x1b   : > { %s617_s24 = sshll.u32 %s4634_s5, 4  ;;  %s4635_s6 = smov [#allocation13]   ;;  %s4805_s24 = int_to_ptr.vmem [resolvable:$true] %s617_s24 }
  0x1c   : > { %s5497_s4 = scalar_select %p4791_p3, 1, 0 }
  0x1d   : > { %p4017_p4 = pneg %p4791_p3  ;;  %s4807_s25 = sshll.u32 %s4635_s6, 4  ;;  %s646_s25 = int_to_ptr.vmem [resolvable:$true] %s4807_s25 }
  0x1e   : > { %s5499_s27 = sld [smem:[#allocation39_spill]] }
  0x1f   : > { %p4801_p5 = pnand %p5479_p2, %p4017_p4 }
  0x21   : > { %p4817_p7 = pneg %p4801_p5 }
  0x24   : > { %s4172_s28 = scalar_lea.hbm %s5499_s27, 512 }
  0x25   : > { %p4173_p6 = scmp.ne.s32.totalorder %s5499_s27, %s4172_s28  ;;  %p4179_p10 = scmp.lt.u32.totalorder %s4172_s28, %s5499_s27 }
  0x27   : > { %p4175_p8 = pnand %p4817_p7, %p4173_p6 }
  0x29   : > { %p4176_p9 = pneg %p4175_p8 }
  0x2b   : > { %p4181_p11 = pnand %p4179_p10, %p4176_p9 }
  0x2d   : > { %4184 = shalt.err (!%p4181_p11)
}
  0x2e   : > { %s4185_s3 = scalar_lea.vmem %s4789_s29, 512  ;;  %p4193_p1 = scmp.lt.s32.totalorder %s4789_s29, %s4789_s29 }
  0x2f   : > { %p4186_p12 = scmp.ne.s32.totalorder %s4789_s29, %s4185_s3  ;;  %p4194_p4 = scmp.lt.s32.totalorder %s4185_s3, %s4185_s3 }
  0x31   : > { %p4188_p13 = pnand %p4186_p12, %p4817_p7  ;;  %p4195_p6 = por %p4194_p4, %p4193_p1 }
  0x33   : > { %p4189_p0 = pneg %p4188_p13 }
  0x35   : > { %p4196_p8 = pnand %p4195_p6, %p4189_p0 }
  0x37   : > { %4199 = shalt.err (!%p4196_p8)
}
  0x38   : > { %s5481_s26 = smov 128   ;;  %s5482_s2 = smov 8  }
  0x39   : > { %4023 = dma.hbm_to_vmem [thread:$0]  (!%p4801_p5), %s5499_s27, 512, %s4789_s29, [#allocation5], %s5481_s26, %s5481_s26, %s5482_s2  }
  0x3a   : > { %s5501_s21 = sld [smem:[#allocation41_spill]] }
  0x40   : > { %s4200_s3 = scalar_lea.hbm %s5501_s21, 512 }
  0x41   : > { %p4201_p9 = scmp.ne.s32.totalorder %s5501_s21, %s4200_s3  ;;  %p4207_p12 = scmp.lt.u32.totalorder %s4200_s3, %s5501_s21 }
  0x43   : > { %p4203_p10 = pnand %p4201_p9, %p4817_p7 }
  0x45   : > { %p4204_p11 = pneg %p4203_p10 }
  0x47   : > { %p4209_p13 = pnand %p4207_p12, %p4204_p11 }
  0x49   : > { %4212 = shalt.err (!%p4209_p13)
}
  0x4a   : > { %s4213_s29 = scalar_lea.vmem %s4797_s23, 512  ;;  %p4221_p6 = scmp.lt.s32.totalorder %s4797_s23, %s4797_s23 }
  0x4b   : > { %p4214_p0 = scmp.ne.s32.totalorder %s4797_s23, %s4213_s29  ;;  %p4222_p8 = scmp.lt.s32.totalorder %s4213_s29, %s4213_s29 }
  0x4d   : > { %p4216_p1 = pnand %p4214_p0, %p4817_p7  ;;  %p4223_p9 = por %p4222_p8, %p4221_p6 }
  0x4f   : > { %p4217_p4 = pneg %p4216_p1 }
  0x51   : > { %p4224_p10 = pnand %p4223_p9, %p4217_p4 }
  0x53   : > { %4227 = shalt.err (!%p4224_p10)
}
  0x54   : > { %4029 = dma.hbm_to_vmem [thread:$0]  (!%p4801_p5), %s5501_s21, 512, %s4797_s23, [#allocation8], %s5481_s26, %s5481_s26, %s5482_s2  }
  0x55   : > { %s4228_s28 = scalar_lea.hbm %s5454_s8, 512 }
  0x56   : > { %p4229_p11 = scmp.ne.s32.totalorder %s5454_s8, %s4228_s28  ;;  %p4235_p0 = scmp.lt.u32.totalorder %s4228_s28, %s5454_s8 }
  0x58   : > { %p4231_p12 = pnand %p4229_p11, %p4817_p7 }
  0x5a   : > { %p4232_p13 = pneg %p4231_p12 }
  0x5c   : > { %p4237_p1 = pnand %p4235_p0, %p4232_p13 }
  0x5e   : > { %4240 = shalt.err (!%p4237_p1)
}
  0x5f   : > { %s4241_s23 = scalar_lea.vmem %s4805_s24, 512  ;;  %p4249_p9 = scmp.lt.s32.totalorder %s4805_s24, %s4805_s24 }
  0x60   : > { %p4242_p4 = scmp.ne.s32.totalorder %s4805_s24, %s4241_s23  ;;  %p4250_p10 = scmp.lt.s32.totalorder %s4241_s23, %s4241_s23 }
  0x62   : > { %p4244_p6 = pnand %p4242_p4, %p4817_p7  ;;  %p4251_p11 = por %p4250_p10, %p4249_p9 }
  0x64   : > { %p4245_p8 = pneg %p4244_p6 }
  0x66   : > { %p4252_p12 = pnand %p4251_p11, %p4245_p8 }
  0x68   : > { %4255 = shalt.err (!%p4252_p12)
}
  0x69   : > { %4035 = dma.hbm_to_vmem [thread:$0]  (!%p4801_p5), %s5454_s8, 512, %s4805_s24, [#allocation11], %s5481_s26, %s5481_s26, %s5482_s2  }
  0x6a   : > { %s4256_s30 = scalar_lea.hbm %s5457_s11, 16 }
  0x6b   : > { %p4257_p13 = scmp.ne.s32.totalorder %s5457_s11, %s4256_s30  ;;  %p4263_p4 = scmp.lt.u32.totalorder %s4256_s30, %s5457_s11 }
  0x6d   : > { %p4259_p0 = pnand %p4257_p13, %p4817_p7 }
  0x6f   : > { %p4260_p1 = pneg %p4259_p0 }
  0x71   : > { %p4265_p6 = pnand %p4263_p4, %p4260_p1 }
  0x73   : > { %4268 = shalt.err (!%p4265_p6)
}
  0x74   : > { %s4269_s3 = scalar_lea.vmem %s646_s25, 16  ;;  %s4276_s24 = scalar_lea.vmem %s646_s25, 32 }
  0x75   : > { %p4270_p8 = scmp.ne.s32.totalorder %s646_s25, %s4269_s3  ;;  %p4277_p11 = scmp.lt.s32.totalorder %s646_s25, %s646_s25 }
  0x76   : > { %p4278_p12 = scmp.lt.s32.totalorder %s4276_s24, %s4269_s3 }
  0x77   : > { %p4272_p9 = pnand %p4270_p8, %p4817_p7 }
  0x78   : > { %p4279_p2 = por %p4278_p12, %p4277_p11 }
  0x79   : > { %p4273_p10 = pneg %p4272_p9 }
  0x7b   : > { %p4280_p3 = pnand %p4279_p2, %p4273_p10 }
  0x7d   : > { %4283 = shalt.err (!%p4280_p3)
}
  0x7e   : > { %4041 = dma.hbm_to_vmem [thread:$0]  (!%p4801_p5), %s5457_s11, 16, %s646_s25, [#allocation14]  }
  0x7f   : > { %s4638_s10 = smov [#allocation16]   ;;  %s4639_s19 = smov [#allocation19]  }
  0x80   : > { %s667_s18 = sshll.u32 %s4638_s10, 4  ;;  %s689_s30 = sshll.u32 %s4639_s19, 4  ;;  %s668_s18 = int_to_ptr.vmem [resolvable:$true] %s667_s18  ;;  %s690_s30 = int_to_ptr.vmem [resolvable:$true] %s689_s30 }
  0x81   : > { %s4284_s5 = scalar_lea.hbm %s5459_s13, 16 }
  0x82   : > { %p4285_p2 = scmp.ne.s32.totalorder %s5459_s13, %s4284_s5  ;;  %p4291_p0 = scmp.lt.u32.totalorder %s4284_s5, %s5459_s13 }
  0x84   : > { %p4287_p3 = pnand %p4285_p2, %p4817_p7 }
  0x86   : > { %p4288_p13 = pneg %p4287_p3 }
  0x88   : > { %p4293_p1 = pnand %p4291_p0, %p4288_p13 }
  0x8a   : > { %4296 = shalt.err (!%p4293_p1)
}
  0x8b   : > { %s4297_s25 = scalar_lea.vmem %s668_s18, 16  ;;  %s4304_s29 = scalar_lea.vmem %s668_s18, 32 }
  0x8c   : > { %p4298_p4 = scmp.ne.s32.totalorder %s668_s18, %s4297_s25  ;;  %p4305_p9 = scmp.lt.s32.totalorder %s668_s18, %s668_s18 }
  0x8d   : > { %p4306_p10 = scmp.lt.s32.totalorder %s4304_s29, %s4297_s25 }
  0x8e   : > { %p4300_p6 = pnand %p4298_p4, %p4817_p7 }
  0x8f   : > { %p4307_p11 = por %p4306_p10, %p4305_p9 }
  0x90   : > { %p4301_p8 = pneg %p4300_p6 }
  0x92   : > { %p4308_p12 = pnand %p4307_p11, %p4301_p8 }
  0x94   : > { %4311 = shalt.err (!%p4308_p12)
}
  0x95   : > { %4047 = dma.hbm_to_vmem [thread:$0]  (!%p4801_p5), %s5459_s13, 16, %s668_s18, [#allocation17]  }
  0x96   : > { %s4312_s5 = scalar_lea.hbm %s5461_s15, 16 }
  0x97   : > { %p4313_p2 = scmp.ne.s32.totalorder %s5461_s15, %s4312_s5  ;;  %p4319_p0 = scmp.lt.u32.totalorder %s4312_s5, %s5461_s15 }
  0x99   : > { %p4315_p3 = pnand %p4313_p2, %p4817_p7 }
  0x9b   : > { %p4316_p13 = pneg %p4315_p3 }
  0x9d   : > { %p4321_p1 = pnand %p4319_p0, %p4316_p13 }
  0x9f   : > { %4324 = shalt.err (!%p4321_p1)
}
  0xa0   : > { %s4325_s25 = scalar_lea.vmem %s690_s30, 16  ;;  %s4332_s18 = scalar_lea.vmem %s690_s30, 32 }
  0xa1   : > { %p4326_p4 = scmp.ne.s32.totalorder %s690_s30, %s4325_s25  ;;  %p4333_p9 = scmp.lt.s32.totalorder %s690_s30, %s690_s30 }
  0xa2   : > { %p4334_p10 = scmp.lt.s32.totalorder %s4332_s18, %s4325_s25 }
  0xa3   : > { %p4328_p6 = pnand %p4326_p4, %p4817_p7 }
  0xa4   : > { %p4335_p11 = por %p4334_p10, %p4333_p9 }
  0xa5   : > { %p4329_p8 = pneg %p4328_p6 }
  0xa7   : > { %p4336_p12 = pnand %p4335_p11, %p4329_p8 }
  0xa9   : > { %4339 = shalt.err (!%p4336_p12)
}
  0xaa   : > { %4053 = dma.hbm_to_vmem [thread:$0]  (!%p4801_p5), %s5461_s15, 16, %s690_s30, [#allocation20]  }
  0xab   : > { %s4640_s19 = smov [#allocation22]   ;;  %s4641_s0 = smov [#allocation2]  }
  0xac   : > { %s711_s28 = sshll.u32 %s4640_s19, 4  ;;  %s559_s5 = sshll.u32 %s4641_s0, 4  ;;  %s712_s28 = int_to_ptr.vmem [resolvable:$true] %s711_s28  ;;  %s560_s5 = int_to_ptr.vmem [resolvable:$true] %s559_s5 }
  0xad   : > { %s4340_s24 = scalar_lea.hbm %s5463_s17, 16 }
  0xae   : > { %p4341_p2 = scmp.ne.s32.totalorder %s5463_s17, %s4340_s24  ;;  %p4347_p0 = scmp.lt.u32.totalorder %s4340_s24, %s5463_s17 }
  0xb0   : > { %p4343_p3 = pnand %p4341_p2, %p4817_p7 }
  0xb2   : > { %p4344_p13 = pneg %p4343_p3 }
  0xb4   : > { %p4349_p1 = pnand %p4347_p0, %p4344_p13 }
  0xb6   : > { %4352 = shalt.err (!%p4349_p1)
}
  0xb7   : > { %s4353_s30 = scalar_lea.vmem %s712_s28, 16  ;;  %s4360_s10 = scalar_lea.vmem %s712_s28, 32 }
  0xb8   : > { %p4354_p4 = scmp.ne.s32.totalorder %s712_s28, %s4353_s30  ;;  %p4361_p9 = scmp.lt.s32.totalorder %s712_s28, %s712_s28 }
  0xb9   : > { %p4362_p10 = scmp.lt.s32.totalorder %s4360_s10, %s4353_s30 }
  0xba   : > { %p4356_p6 = pnand %p4354_p4, %p4817_p7 }
  0xbb   : > { %p4363_p11 = por %p4362_p10, %p4361_p9 }
  0xbc   : > { %p4357_p8 = pneg %p4356_p6 }
  0xbe   : > { %p4364_p12 = pnand %p4363_p11, %p4357_p8 }
  0xc0   : > { %4367 = shalt.err (!%p4364_p12)
}
  0xc1   : > { %4059 = dma.hbm_to_vmem [thread:$0]  (!%p4801_p5), %s5463_s17, 16, %s712_s28, [#allocation23]  }
  0xc2   : > { %s5502_s24 = sld [smem:[#allocation38_spill]] }
  0xc8   : > { %s4368_s23 = scalar_lea.hbm %s5502_s24, 16 }
  0xc9   : > { %p4369_p2 = scmp.ne.s32.totalorder %s5502_s24, %s4368_s23  ;;  %p4375_p0 = scmp.lt.u32.totalorder %s4368_s23, %s5502_s24 }
  0xcb   : > { %p4371_p3 = pnand %p4369_p2, %p4817_p7 }
  0xcd   : > { %p4372_p13 = pneg %p4371_p3 }
  0xcf   : > { %p4377_p1 = pnand %p4375_p0, %p4372_p13 }
  0xd1   : > { %4380 = shalt.err (!%p4377_p1)
}
  0xd2   : > { %s4381_s10 = scalar_lea.vmem %s560_s5, 16  ;;  %s4388_s28 = scalar_lea.vmem %s560_s5, 32 }
  0xd3   : > { %p4382_p4 = scmp.ne.s32.totalorder %s560_s5, %s4381_s10  ;;  %p4389_p9 = scmp.lt.s32.totalorder %s560_s5, %s560_s5 }
  0xd4   : > { %p4390_p10 = scmp.lt.s32.totalorder %s4388_s28, %s4381_s10 }
  0xd5   : > { %p4384_p6 = pnand %p4382_p4, %p4817_p7 }
  0xd6   : > { %p4391_p11 = por %p4390_p10, %p4389_p9 }
  0xd7   : > { %p4385_p8 = pneg %p4384_p6 }
  0xd9   : > { %p4392_p12 = pnand %p4391_p11, %p4385_p8 }
  0xdb   : > { %4395 = shalt.err (!%p4392_p12)
}
  0xdc   : > { %4020 = dma.hbm_to_vmem [thread:$0]  (!%p4801_p5), %s5502_s24, 16, %s560_s5, [#allocation3]  }
  0xdd   : > { %s4642_s6 = smov [#allocation6]   ;;  %s4643_s23 = smov [#allocation9]  }
  0xde   : > { %s583_s3 = sshll.u32 %s4642_s6, 4  ;;  %s607_s25 = sshll.u32 %s4643_s23, 4  ;;  %s584_s3 = int_to_ptr.vmem [resolvable:$true] %s583_s3  ;;  %s608_s25 = int_to_ptr.vmem [resolvable:$true] %s607_s25 }
  0xdf   : > { %s5503_s30 = sld [smem:[#allocation40_spill]] }
  0xe5   : > { %s4396_s26 = scalar_lea.hbm %s5503_s30, 16 }
  0xe6   : > { %p4397_p2 = scmp.ne.s32.totalorder %s5503_s30, %s4396_s26  ;;  %p4403_p0 = scmp.lt.u32.totalorder %s4396_s26, %s5503_s30 }
  0xe8   : > { %p4399_p3 = pnand %p4397_p2, %p4817_p7 }
  0xea   : > { %p4400_p13 = pneg %p4399_p3 }
  0xec   : > { %p4405_p1 = pnand %p4403_p0, %p4400_p13 }
  0xee   : > { %4408 = shalt.err (!%p4405_p1)
}
  0xef   : > { %s4409_s5 = scalar_lea.vmem %s584_s3, 16  ;;  %s4416_s0 = scalar_lea.vmem %s584_s3, 32 }
  0xf0   : > { %p4410_p4 = scmp.ne.s32.totalorder %s584_s3, %s4409_s5  ;;  %p4417_p9 = scmp.lt.s32.totalorder %s584_s3, %s584_s3 }
  0xf1   : > { %p4418_p10 = scmp.lt.s32.totalorder %s4416_s0, %s4409_s5 }
  0xf2   : > { %p4412_p6 = pnand %p4410_p4, %p4817_p7 }
  0xf3   : > { %p4419_p11 = por %p4418_p10, %p4417_p9 }
  0xf4   : > { %p4413_p8 = pneg %p4412_p6 }
  0xf6   : > { %p4420_p12 = pnand %p4419_p11, %p4413_p8 }
  0xf8   : > { %4423 = shalt.err (!%p4420_p12)
}
  0xf9   : > { %4026 = dma.hbm_to_vmem [thread:$0]  (!%p4801_p5), %s5503_s30, 16, %s584_s3, [#allocation5]  }
  0xfa   : > { %s4424_s18 = scalar_lea.hbm %s5453_s7, 16 }
  0xfb   : > { %p4425_p2 = scmp.ne.s32.totalorder %s5453_s7, %s4424_s18  ;;  %p4431_p0 = scmp.lt.u32.totalorder %s4424_s18, %s5453_s7 }
  0xfd   : > { %p4427_p3 = pnand %p4425_p2, %p4817_p7 }
  0xff   : > { %p4428_p13 = pneg %p4427_p3 }
 0x101   : > { %p4433_p1 = pnand %p4431_p0, %p4428_p13 }
 0x103   : > { %4436 = shalt.err (!%p4433_p1)
}
 0x104   : > { %s4437_s5 = scalar_lea.vmem %s608_s25, 16  ;;  %s4444_s3 = scalar_lea.vmem %s608_s25, 32 }
 0x105   : > { %p4438_p4 = scmp.ne.s32.totalorder %s608_s25, %s4437_s5  ;;  %p4445_p9 = scmp.lt.s32.totalorder %s608_s25, %s608_s25 }
 0x106   : > { %p4446_p10 = scmp.lt.s32.totalorder %s4444_s3, %s4437_s5 }
 0x107   : > { %p4440_p6 = pnand %p4438_p4, %p4817_p7 }
 0x108   : > { %p4447_p11 = por %p4446_p10, %p4445_p9 }
 0x109   : > { %p4441_p8 = pneg %p4440_p6 }
 0x10b   : > { %p4448_p12 = pnand %p4447_p11, %p4441_p8 }
 0x10d   : > { %4451 = shalt.err (!%p4448_p12)
}
 0x10e   : > { %4032 = dma.hbm_to_vmem [thread:$0]  (!%p4801_p5), %s5453_s7, 16, %s608_s25, [#allocation8]  }
 0x10f   : > { %s4644_s23 = smov [#allocation12]   ;;  %s4645_s2 = smov [#allocation15]  }
 0x110   : > { %s631_s26 = sshll.u32 %s4644_s23, 4  ;;  %s656_s18 = sshll.u32 %s4645_s2, 4  ;;  %s632_s26 = int_to_ptr.vmem [resolvable:$true] %s631_s26  ;;  %s657_s18 = int_to_ptr.vmem [resolvable:$true] %s656_s18 }
 0x111   : > { %s4452_s28 = scalar_lea.hbm %s5455_s9, 16 }
 0x112   : > { %p4453_p2 = scmp.ne.s32.totalorder %s5455_s9, %s4452_s28  ;;  %p4459_p0 = scmp.lt.u32.totalorder %s4452_s28, %s5455_s9 }
 0x114   : > { %p4455_p3 = pnand %p4453_p2, %p4817_p7 }
 0x116   : > { %p4456_p13 = pneg %p4455_p3 }
 0x118   : > { %p4461_p1 = pnand %p4459_p0, %p4456_p13 }
 0x11a   : > { %4464 = shalt.err (!%p4461_p1)
}
 0x11b   : > { %s4465_s25 = scalar_lea.vmem %s632_s26, 16  ;;  %s4472_s6 = scalar_lea.vmem %s632_s26, 32 }
 0x11c   : > { %p4466_p4 = scmp.ne.s32.totalorder %s632_s26, %s4465_s25  ;;  %p4473_p9 = scmp.lt.s32.totalorder %s632_s26, %s632_s26 }
 0x11d   : > { %p4474_p10 = scmp.lt.s32.totalorder %s4472_s6, %s4465_s25 }
 0x11e   : > { %p4468_p6 = pnand %p4466_p4, %p4817_p7 }
 0x11f   : > { %p4475_p11 = por %p4474_p10, %p4473_p9 }
 0x120   : > { %p4469_p8 = pneg %p4468_p6 }
 0x122   : > { %p4476_p12 = pnand %p4475_p11, %p4469_p8 }
 0x124   : > { %4479 = shalt.err (!%p4476_p12)
}
 0x125   : > { %4038 = dma.hbm_to_vmem [thread:$0]  (!%p4801_p5), %s5455_s9, 16, %s632_s26, [#allocation11]  }
 0x126   : > { %s4480_s28 = scalar_lea.hbm %s5458_s12, 16 }
 0x127   : > { %p4481_p2 = scmp.ne.s32.totalorder %s5458_s12, %s4480_s28  ;;  %p4487_p0 = scmp.lt.u32.totalorder %s4480_s28, %s5458_s12 }
 0x129   : > { %p4483_p3 = pnand %p4481_p2, %p4817_p7 }
 0x12b   : > { %p4484_p13 = pneg %p4483_p3 }
 0x12d   : > { %p4489_p1 = pnand %p4487_p0, %p4484_p13 }
 0x12f   : > { %4492 = shalt.err (!%p4489_p1)
}
 0x130   : > { %s4493_s25 = scalar_lea.vmem %s657_s18, 16  ;;  %s4500_s26 = scalar_lea.vmem %s657_s18, 32 }
 0x131   : > { %p4494_p4 = scmp.ne.s32.totalorder %s657_s18, %s4493_s25  ;;  %p4501_p9 = scmp.lt.s32.totalorder %s657_s18, %s657_s18 }
 0x132   : > { %p4502_p10 = scmp.lt.s32.totalorder %s4500_s26, %s4493_s25 }
 0x133   : > { %p4496_p6 = pnand %p4494_p4, %p4817_p7 }
 0x134   : > { %p4503_p11 = por %p4502_p10, %p4501_p9 }
 0x135   : > { %p4497_p8 = pneg %p4496_p6 }
 0x137   : > { %p4504_p12 = pnand %p4503_p11, %p4497_p8 }
 0x139   : > { %4507 = shalt.err (!%p4504_p12)
}
 0x13a   : > { %4044 = dma.hbm_to_vmem [thread:$0]  (!%p4801_p5), %s5458_s12, 16, %s657_s18, [#allocation14]  }
 0x13b   : > { %s4646_s2 = smov [#allocation18]   ;;  %s4647_s10 = smov [#allocation21]  }
 0x13c   : > { %s678_s29 = sshll.u32 %s4646_s2, 4  ;;  %s700_s28 = sshll.u32 %s4647_s10, 4  ;;  %s679_s29 = int_to_ptr.vmem [resolvable:$true] %s678_s29  ;;  %s701_s28 = int_to_ptr.vmem [resolvable:$true] %s700_s28 }
 0x13d   : > { %s4508_s3 = scalar_lea.hbm %s5460_s14, 16 }
 0x13e   : > { %p4509_p2 = scmp.ne.s32.totalorder %s5460_s14, %s4508_s3  ;;  %p4515_p0 = scmp.lt.u32.totalorder %s4508_s3, %s5460_s14 }
 0x140   : > { %p4511_p3 = pnand %p4509_p2, %p4817_p7 }
 0x142   : > { %p4512_p13 = pneg %p4511_p3 }
 0x144   : > { %p4517_p1 = pnand %p4515_p0, %p4512_p13 }
 0x146   : > { %4520 = shalt.err (!%p4517_p1)
}
 0x147   : > { %s4521_s18 = scalar_lea.vmem %s679_s29, 16  ;;  %s4528_s23 = scalar_lea.vmem %s679_s29, 32 }
 0x148   : > { %p4522_p4 = scmp.ne.s32.totalorder %s679_s29, %s4521_s18  ;;  %p4529_p9 = scmp.lt.s32.totalorder %s679_s29, %s679_s29 }
 0x149   : > { %p4530_p10 = scmp.lt.s32.totalorder %s4528_s23, %s4521_s18 }
 0x14a   : > { %p4524_p6 = pnand %p4522_p4, %p4817_p7 }
 0x14b   : > { %p4531_p11 = por %p4530_p10, %p4529_p9 }
 0x14c   : > { %p4525_p8 = pneg %p4524_p6 }
 0x14e   : > { %p4532_p12 = pnand %p4531_p11, %p4525_p8 }
 0x150   : > { %4535 = shalt.err (!%p4532_p12)
}
 0x151   : > { %4050 = dma.hbm_to_vmem [thread:$0]  (!%p4801_p5), %s5460_s14, 16, %s679_s29, [#allocation17]  }
 0x152   : > { %s4536_s3 = scalar_lea.hbm %s5462_s16, 16 }
 0x153   : > { %p4537_p2 = scmp.ne.s32.totalorder %s5462_s16, %s4536_s3  ;;  %p4543_p0 = scmp.lt.u32.totalorder %s4536_s3, %s5462_s16 }
 0x155   : > { %p4539_p3 = pnand %p4537_p2, %p4817_p7 }
 0x157   : > { %p4540_p13 = pneg %p4539_p3 }
 0x159   : > { %p4545_p1 = pnand %p4543_p0, %p4540_p13 }
 0x15b   : > { %4548 = shalt.err (!%p4545_p1)
}
 0x15c   : > { %s4549_s18 = scalar_lea.vmem %s701_s28, 16  ;;  %s4556_s29 = scalar_lea.vmem %s701_s28, 32 }
 0x15d   : > { %p4550_p4 = scmp.ne.s32.totalorder %s701_s28, %s4549_s18  ;;  %p4557_p9 = scmp.lt.s32.totalorder %s701_s28, %s701_s28 }
 0x15e   : > { %p4558_p10 = scmp.lt.s32.totalorder %s4556_s29, %s4549_s18 }
 0x15f   : > { %p4552_p6 = pnand %p4550_p4, %p4817_p7 }
 0x160   : > { %p4559_p11 = por %p4558_p10, %p4557_p9 }
 0x161   : > { %p4553_p8 = pneg %p4552_p6 }
 0x163   : > { %p4560_p12 = pnand %p4559_p11, %p4553_p8 }
 0x165   : > { %4563 = shalt.err (!%p4560_p12)
}
 0x166   : > { %4056 = dma.hbm_to_vmem [thread:$0]  (!%p4801_p5), %s5462_s16, 16, %s701_s28, [#allocation20]  }
 0x167   : > { %s4648_s10 = smov [#allocation24]   ;;  %s4564_s0 = scalar_lea.hbm %s5466_s20, 512 }
 0x168   : > { %s727_s19 = sshll.u32 %s4648_s10, 4  ;;  %p4565_p2 = scmp.ne.s32.totalorder %s5466_s20, %s4564_s0  ;;  %s728_s19 = int_to_ptr.vmem [resolvable:$true] %s727_s19 }
 0x169   : > { %p4571_p0 = scmp.lt.u32.totalorder %s4564_s0, %s5466_s20 }
 0x16a   : > { %p4567_p3 = pnand %p4565_p2, %p4817_p7 }
 0x16c   : > { %p4568_p13 = pneg %p4567_p3 }
 0x16e   : > { %p4573_p1 = pnand %p4571_p0, %p4568_p13 }
 0x170   : > { %4576 = shalt.err (!%p4573_p1)
}
 0x171   : > { %s4577_s28 = scalar_lea.vmem %s728_s19, 512  ;;  %p4585_p9 = scmp.lt.s32.totalorder %s728_s19, %s728_s19 }
 0x172   : > { %p4578_p4 = scmp.ne.s32.totalorder %s728_s19, %s4577_s28  ;;  %p4586_p10 = scmp.lt.s32.totalorder %s4577_s28, %s4577_s28 }
 0x174   : > { %p4580_p6 = pnand %p4578_p4, %p4817_p7  ;;  %p4587_p11 = por %p4586_p10, %p4585_p9 }
 0x176   : > { %p4581_p8 = pneg %p4580_p6 }
 0x178   : > { %p4588_p12 = pnand %p4587_p11, %p4581_p8 }
 0x17a   : > { %4591 = shalt.err (!%p4588_p12)
}
 0x17b   : > { %s5504_s29 = smov 8   ;;  %s5505_s23 = smov 128  }
 0x17c   : > { %4062 = dma.hbm_to_vmem [thread:$0]  (!%p4801_p5), %s5466_s20, 512, %s728_s19, [#allocation23], %s5505_s23, %s5505_s23, %s5504_s29  }
 0x17d   : > { %p5506_p2 = scmp.ne.s32.totalorder %s5497_s4, 0 }
 0x17e   : > { %s5507_s22 = sld [smem:[#allocation34_spill]] (!%p5506_p2) }
 0x17f   : > { %760 = sbr.rel (%p5506_p2) target bundleno = 6957 (0x1b2d), region = 108 }
 0x184   : > { %p5508_p7 = scmp.eq.s32.totalorder (!%p5506_p2), %s5507_s22, 0 }
 0x186   : > { %4597 = dma.done.wait (%p5508_p7), [#allocation3], 16   ;;  %p5509_p3 = pmov %p5508_p7 }
 0x188   : > { %4599 = vsyncadd (%p5509_p3), [#allocation3], 4294967280  ;;  %p5510_p13 = pmov %p5509_p3 }
 0x189   : > { %p5511_p0 = pmov %p5509_p3 }
 0x18a   : > { %4601 = dma.done.wait (%p5510_p13), [#allocation5], 528  }
 0x18b   : > { %4603 = vsyncadd (%p5511_p0), [#allocation5], 4294966768  ;;  %p5512_p1 = pmov %p5511_p0 }
 0x18c   : > { %p5513_p5 = pmov %p5511_p0 }
 0x18d   : > { %4605 = dma.done.wait (%p5512_p1), [#allocation8], 528  }
 0x18e   : > { %4607 = vsyncadd (%p5513_p5), [#allocation8], 4294966768  ;;  %p5514_p4 = pmov %p5511_p0 }
 0x18f   : > { %p5515_p6 = pmov %p5511_p0 }
 0x190   : > { %4609 = dma.done.wait (%p5514_p4), [#allocation11], 528  }
 0x191   : > { %4611 = vsyncadd (%p5515_p6), [#allocation11], 4294966768  ;;  %p5516_p8 = pmov %p5511_p0 }
 0x192   : > { %p5517_p9 = pmov %p5511_p0 }
 0x193   : > { %4613 = dma.done.wait (%p5516_p8), [#allocation14], 32  }
 0x194   : > { %4615 = vsyncadd (%p5517_p9), [#allocation14], 4294967264  ;;  %p5518_p10 = pmov %p5511_p0 }
 0x195   : > { %p5519_p11 = pmov %p5511_p0 }
 0x196   : > { %4617 = dma.done.wait (%p5518_p10), [#allocation17], 32  }
 0x197   : > { %4619 = vsyncadd (%p5519_p11), [#allocation17], 4294967264  ;;  %p5520_p12 = pmov %p5511_p0 }
 0x198   : > { %p5521_p2 = pmov %p5511_p0 }
 0x199   : > { %4621 = dma.done.wait (%p5520_p12), [#allocation20], 32  }
 0x19a   : > { %4623 = vsyncadd (%p5521_p2), [#allocation20], 4294967264  ;;  %p5522_p7 = pmov %p5511_p0 }
 0x19b   : > { %p5523_p3 = pmov %p5511_p0 }
 0x19c   : > { %4625 = dma.done.wait (%p5522_p7), [#allocation23], 528  }
 0x19d   : > { %4627 = vsyncadd (%p5523_p3), [#allocation23], 4294966768  ;;  %p880_p13 = scmp.lt.s32.totalorder %s5507_s22, 1  ;;  %v4649_v0 = vmov 0.0|0.0   ;;  %vm4650_vm0 = vmmov 0   ;;  %v4651_v1 = vmov 0.0   ;;  %v894_v16 = vlaneseq }
 0x19e   : > { %3927 = vmatprep.subr.bf16.mxu0 %v4649_v0  ;;  %3760 = vmatprep.mubr.msk.f32.mxu0 %vm4650_vm0, %v4651_v1  ;;  %s5524_s19 = sld [smem:[#allocation37_spill]]  ;;  %s5525_s23 = sld [smem:[#allocation35_spill]]  ;;  %vm910_vm1 = vcmask 261120   ;;  %v3619_v9 = vld [vmem:[#allocation2] ss:$0 sm:$0xff]  ;;  %vm992_vm2 = vcmask 64512  }
 0x19f   : > { %3763 = vmatprep.subr.mxu1 %v4651_v1  ;;  %3765 = vmatprep.mubr.msk.f32.mxu1 %vm4650_vm0, %v4651_v1  ;;  %s5536_s22 = smov (!%p880_p13, %s5507_s22), 1  ;;  %s4652_s10 = smov 56   ;;  %v895_v17 = vshrl.u32 %v894_v16, 7  ;;  %v897_v18 = vand.u32 127, %v894_v16  ;;  %vm1068_vm4 = vcmask 18432   ;;  %vm1086_vm5 = vcmask 1042432  }
 0x1a0   : > { %s5167_s18 = sshll.u32 %s5536_s22, 2  ;;  %s4653_s22 = smov 64   ;;  %vm1082_vm6 = vcmask 23552   ;;  %v984_v46 = vld [vmem:[#allocation4] sm:$0xff]  ;;  %v985_v47 = vld [vmem:[#allocation4 + $0x8] sm:$0xff]  ;;  %vm1964_vm7 = vcmask 256000  }
 0x1a1   : > { %s4654_s4 = smov 120   ;;  %vm5198_vm3 = vcmp.le.s32.totalorder %v897_v18, %v895_v17  ;;  %s4655_s1 = smov 96  }
 0x1a2   : > { %s4656_s5 = smov 88   ;;  %s4657_s3 = smov 48  }
 0x1a3   : > { %s4658_s0 = smov 112   ;;  %s4659_s25 = smov 104  }
 0x1a4   : > { %v899_v2 = vld [vmem:[%s5524_s19] sm:$0xff]  ;;  %v900_v3 = vld [vmem:[%s5524_s19 + $0x8] sm:$0xff]  ;;  %v901_v4 = vld [vmem:[%s5524_s19 + $0x10] sm:$0xff]  ;;  %s883_s2 = scalar_lea.vmem %s5525_s23, %s5167_s18  ;;  %s4660_s26 = smov 40  }
 0x1a5   : > { %v3928_v5 = vpack.c.bf16 %v900_v3, %v899_v2  ;;  %v902_v6 = vld [vmem:[%s5524_s19 + $0x18] sm:$0xff]  ;;  %v5174_v8 = vld [vmem:[%s883_s2] sm:$0x7]  ;;  %s4661_s6 = smov 80   ;;  %s4662_s28 = smov 72  }
 0x1a6   : > { %v3931_v7 = vpack.c.bf16 %v902_v6, %v901_v4  ;;  %s5528_s2 = sld [smem:[#allocation36_spill]]  ;;  %s5530_s23 = sld [smem:[#allocation43_spill]] }
 0x1a7   : > { %3929 = vmatpush3.bf16.msra.mxu0 %v3928_v5  ;;  %s5532_s29 = sld [smem:[#allocation45_spill]] }
 0x1a8   : > { %3930 = vmatprep.subr.bf16.mxu0 %v4649_v0 }
 0x1ab   : > { %3932 = vmatpush3.bf16.msra.mxu0 %v3931_v7 }
 0x1ac   : > { %3773 = vmatprep.subr.mxu0 %v4651_v1 }
 0x1ae   : > { %3761 = vmatmul.mubr.msk.f32.vlgmr.msra.gmra.mrb[0].mxu0 %vm910_vm1, %v5174_v8 }
 0x1af   : > { %3775 = vmatprep.mubr.msk.f32.mxu0 %vm4650_vm0, %v4651_v1 }
 0x281   : > { %v980_v10 = vpop.f32.mrb[0].mxu0 }
 0x282   : > { %v5181_v11 = vadd.f32 %v3619_v9, %v980_v10  ;;  %v3762_v12 = vpop.f32.mrb[1].mxu0 }
 0x284   : > { %1159 = vrot.lane.b32.xlu1 %v5181_v11, %s4652_s10  ;;  %990 = vrot.lane.b32.xlu0 %v5181_v11, %s4653_s22  ;;  %s887_s10 = scalar_lea.vmem %s5528_s2, %s5167_s18  ;;  %s5533_s22 = sld [smem:[#allocation46_spill]] }
 0x285   : > { %3764 = vmatpush3.xpose.msk.msra.mxu1 %vm992_vm2, %v5181_v11 }
 0x286   : > { %3768 = vmatprep.subr.mxu1 %v4651_v1 }
 0x288   : > { %1161 = vrot.lane.b32.xlu0 %v5181_v11, %s4654_s4 }
 0x2f6   : > { %v991_v13 = vpop.permute.xlu0 %990  ;;  %v1160_v15 = vpop.permute.xlu1 %1159 }
 0x2f7   : > { %3766 = vmatmul.mubr.msk.f32.vlgmr.msra.gmra.mrb[0].mxu1 %vm992_vm2, %v991_v13 }
 0x2f8   : > { %3770 = vmatprep.mubr.msk.f32.mxu1 %vm4650_vm0, %v4651_v1 }
 0x2fa   : > { %v1162_v14 = vpop.permute.xlu0 %1161 }
 0x2fb   : > { %3774 = vmatpush3.xpose.msk.msra.mxu0 %vm992_vm2, %v1162_v14  ;;  %v986_v14 = vld [vmem:[#allocation4 + $0x10] sm:$0xff] }
 0x2fc   : > { %3783 = vmatprep.subr.mxu0 %v4651_v1 }
 0x2fe   : > { %3776 = vmatmul.mubr.msk.f32.vlgmr.msra.gmra.mrb[2].mxu0 %vm992_vm2, %v1160_v15 }
 0x2ff   : > { %3785 = vmatprep.mubr.msk.f32.mxu0 %vm4650_vm0, %v4651_v1  ;;  %3784 = vmatpush3.msra.mxu0 %v985_v47 }
 0x300   : > { %3793 = vmatprep.subr.mxu0 %v4651_v1 }
 0x3ca   : > { %v1063_v20 = vpop.f32.mrb[0].mxu1 }
 0x3cb   : > { %v1067_v21 = vsel %vm5198_vm3, %v1063_v20, -1e+30  ;;  %v3767_v22 = vpop.f32.mrb[1].mxu1 }
 0x3cc   : > { %v1069_v23 = vsel %vm1068_vm4, %v1067_v21, -inf }
 0x3cd   : > { %1070 = vmax.xlane.f32.xlu1 %v1069_v23 }
 0x3d1   : > { %v1233_v24 = vpop.f32.mrb[2].mxu0 }
 0x3d2   : > { %v1237_v25 = vsel %vm5198_vm3, %v1233_v24, -1e+30  ;;  %v3777_v26 = vpop.f32.mrb[3].mxu0 }
 0x3d3   : > { %v1238_v27 = vsel %vm1068_vm4, %v1237_v25, -inf }
 0x3d4   : > { %1239 = vmax.xlane.f32.xlu0 %v1238_v27 }
 0x45a   : > { %v1071_v28 = vpop.xlane.xlu1 %1070 }
 0x45b   : > { %v1072_v29 = vsub.f32 %v1067_v21, %v1071_v28  ;;  %v987_v28 = vld [vmem:[#allocation4 + $0x18] sm:$0xff] }
 0x45d   : > { %v1073_v30 = vmul.f32 1.442695, %v1072_v29 }
 0x45f   : > { %4132 = vpow2.f32 %v1073_v30 }
 0x461   : > { %v1240_v31 = vpop.xlane.xlu0 %1239 }
 0x462   : > { %v1241_v32 = vsub.f32 %v1237_v25, %v1240_v31 }
 0x464   : > { %v1242_v33 = vmul.f32 1.442695, %v1241_v32 }
 0x466   : > { %4134 = vpow2.f32 %v1242_v33 }
 0x469   : > { %v4133_v34 = vpop.eup %4132 }
 0x46a   : > { %v1075_v35 = vsel %vm1068_vm4, %v4133_v34, 0.0 }
 0x46b   : > { %1076 = vadd.xlane.f32.xlu0 %v1075_v35 }
 0x470   : > { %v4135_v36 = vpop.eup %4134 }
 0x471   : > { %v1244_v37 = vsel %vm1068_vm4, %v4135_v36, 0.0 }
 0x472   : > { %1245 = vadd.xlane.f32.xlu1 %v1244_v37 }
 0x481   : > { %1080 = vrot.lane.b32.xlu0 %v5181_v11, %s4655_s1 }
 0x483   : > { %1249 = vrot.lane.b32.xlu1 %v5181_v11, %s4656_s5 }
 0x485   : > { %1472 = vrot.lane.b32.xlu0 %v5181_v11, %s4657_s3 }
 0x487   : > { %1474 = vrot.lane.b32.xlu1 %v5181_v11, %s4658_s0 }
 0x4f8   : > { %v1077_v38 = vpop.xlane.xlu0 %1076 }
 0x4f9   : > { %4136 = vrcp.f32 %v1077_v38 }
 0x4fc   : > { %v1081_v39 = vpop.permute.xlu0 %1080 }
 0x4fd   : > { %3769 = vmatpush3.msk.msra.mxu1 %vm1086_vm5, %v1081_v39 }
 0x4fe   : > { %3778 = vmatprep.subr.mxu1 %v4651_v1 }
 0x4ff   : > { %v1246_v40 = vpop.xlane.xlu1 %1245 }
 0x500   : > { %4138 = vrcp.f32 %v1246_v40  ;;  %v1473_v53 = vpop.permute.xlu0 %1472 }
 0x503   : > { %v4137_v41 = vpop.eup %4136  ;;  %v1250_v43 = vpop.permute.xlu1 %1249 }
 0x504   : > { %v1079_v42 = vmul.f32 %v4137_v41, %v4133_v34 }
 0x506   : > { %3771 = vmatmul.mubr.msk.f32.vlgmr.msra.gmra.mrb[2].mxu1 %vm1082_vm6, %v1079_v42 }
 0x507   : > { %3779 = vmatpush3.msk.msra.mxu1 %vm1086_vm5, %v1250_v43  ;;  %3780 = vmatprep.mubr.msk.f32.mxu1 %vm4650_vm0, %v4651_v1  ;;  %v1475_v51 = vpop.permute.xlu1 %1474 }
 0x508   : > { %3788 = vmatprep.subr.mxu1 %v4651_v1 }
 0x50a   : > { %v4139_v44 = vpop.eup %4138 }
 0x50b   : > { %v1248_v45 = vmul.f32 %v4139_v44, %v4135_v36  ;;  %v3641_v36 = vld [vmem:[#allocation6] ss:$0 sm:$0xff] }
 0x50d   : > { %3781 = vmatmul.mubr.msk.f32.vlgmr.msra.gmra.mrb[4].mxu1 %vm1082_vm6, %v1248_v45 }
 0x50e   : > { %3790 = vmatprep.mubr.msk.f32.mxu1 %vm4650_vm0, %v4651_v1  ;;  %3789 = vmatpush3.msra.mxu1 %v984_v46 }
 0x50f   : > { %3798 = vmatprep.subr.mxu1 %v4651_v1 }
 0x5d9   : > { %v1155_v48 = vpop.f32.mrb[2].mxu1 }
 0x5da   : > { %v3772_v49 = vpop.f32.mrb[3].mxu1  ;;  %3791 = vmatmul.mubr.msk.f32.vlgmr.msra.gmra.mrb[6].mxu1 %vm992_vm2, %v1155_v48  ;;  %v1993_v48 = vld [vmem:[#allocation7] sm:$0xff] }
 0x5db   : > { %3800 = vmatprep.mubr.msk.f32.mxu1 %vm4650_vm0, %v4651_v1  ;;  %v1994_v49 = vld [vmem:[#allocation7 + $0x8] sm:$0xff] }
 0x5e0   : > { %v1322_v50 = vpop.f32.mrb[4].mxu1 }
 0x5e1   : > { %v3782_v52 = vpop.f32.mrb[5].mxu1  ;;  %3786 = vmatmul.mubr.msk.f32.vlgmr.msra.gmra.mrb[4].mxu0 %vm992_vm2, %v1322_v50  ;;  %v3934_v50 = vpack.c.bf16 %v1994_v49, %v1993_v48 }
 0x5e2   : > { %3794 = vmatpush3.xpose.msk.msra.mxu0 %vm992_vm2, %v1475_v51  ;;  %3795 = vmatprep.mubr.msk.f32.mxu0 %vm4650_vm0, %v4651_v1  ;;  %v2077_v51 = vld [vmem:[#allocation10] sm:$0xff]  ;;  %v2078_v52 = vld [vmem:[#allocation10 + $0x8] sm:$0xff] }
 0x5e3   : > { %3803 = vmatprep.subr.mxu0 %v4651_v1 }
 0x5e5   : > { %3796 = vmatmul.mubr.msk.f32.vlgmr.msra.gmra.mrb[6].mxu0 %vm992_vm2, %v1473_v53  ;;  %v3940_v53 = vpack.c.bf16 %v2078_v52, %v2077_v51 }
 0x5e6   : > { %3805 = vmatprep.mubr.msk.f32.mxu0 %vm4650_vm0, %v4651_v1  ;;  %3804 = vmatpush3.msra.mxu0 %v986_v14 }
 0x5e7   : > { %3813 = vmatprep.subr.mxu0 %v4651_v1 }
 0x6ad   : > { %v1468_v54 = vpop.f32.mrb[6].mxu1 }
 0x6ae   : > { %v3792_v55 = vpop.f32.mrb[7].mxu1 }
 0x6b4   : > { %v1395_v56 = vpop.f32.mrb[4].mxu0 }
 0x6b5   : > { %v5240_v57 = vadd.f32 %v1468_v54, %v1395_v56  ;;  %v3787_v58 = vpop.f32.mrb[5].mxu0  ;;  %v1995_v54 = vld [vmem:[#allocation7 + $0x10] sm:$0xff] }
 0x6b6   : > { %v2079_v56 = vld [vmem:[#allocation10 + $0x10] sm:$0xff] }
 0x6b8   : > { %v1546_v59 = vpop.f32.mrb[6].mxu0 }
 0x6b9   : > { %v1550_v60 = vsel %vm5198_vm3, %v1546_v59, -1e+30  ;;  %v3797_v61 = vpop.f32.mrb[7].mxu0  ;;  %v5291_v59 = vld [vmem:[%s887_s10] sm:$0x7] }
 0x6ba   : > { %v1551_v62 = vsel %vm1068_vm4, %v1550_v60, -inf }
 0x6bb   : > { %1552 = vmax.xlane.f32.xlu1 %v1551_v62 }
 0x6cc   : > { %1715 = vrot.lane.b32.xlu1 %v5181_v11, %s4659_s25 }
 0x6d0   : > { %1713 = vrot.lane.b32.xlu1 %v5181_v11, %s4660_s26  ;;  %s5531_s26 = sld [smem:[#allocation44_spill]] }
 0x748   : > { %v1553_v63 = vpop.xlane.xlu1 %1552 }
 0x749   : > { %v1554_v2 = vsub.f32 %v1550_v60, %v1553_v63 }
 0x74b   : > { %v1555_v3 = vmul.f32 1.442695, %v1554_v2  ;;  %v3642_v2 = vld [vmem:[#allocation15] ss:$0 sm:$0xff] }
 0x74c   : > { %v1716_v10 = vpop.permute.xlu1 %1715 }
 0x74d   : > { %4140 = vpow2.f32 %v1555_v3 }
 0x750   : > { %v1714_v13 = vpop.permute.xlu1 %1713 }
 0x757   : > { %v4141_v4 = vpop.eup %4140 }
 0x758   : > { %v1557_v5 = vsel %vm1068_vm4, %v4141_v4, 0.0 }
 0x759   : > { %1558 = vadd.xlane.f32.xlu0 %v1557_v5 }
 0x76f   : > { %1562 = vrot.lane.b32.xlu0 %v5181_v11, %s4661_s6 }
 0x7e6   : > { %v1559_v6 = vpop.xlane.xlu0 %1558 }
 0x7e7   : > { %4142 = vrcp.f32 %v1559_v6 }
 0x7ea   : > { %v1563_v7 = vpop.permute.xlu0 %1562 }
 0x7eb   : > { %3799 = vmatpush3.msk.msra.mxu1 %vm1086_vm5, %v1563_v7  ;;  %v3646_v7 = vld [vmem:[#allocation12] ss:$0 sm:$0xff] }
 0x7ec   : > { %3808 = vmatprep.subr.mxu1 %v4651_v1 }
 0x7f1   : > { %v4143_v9 = vpop.eup %4142 }
 0x7f2   : > { %v1561_v12 = vmul.f32 %v4143_v9, %v4141_v4  ;;  %v3643_v4 = vld [vmem:[#allocation16] ss:$0 sm:$0xff] }
 0x7f4   : > { %3801 = vmatmul.mubr.msk.f32.vlgmr.msra.gmra.mrb[8].mxu1 %vm1082_vm6, %v1561_v12 }
 0x7f5   : > { %3809 = vmatpush3.xpose.msk.msra.mxu1 %vm992_vm2, %v1716_v10  ;;  %3810 = vmatprep.mubr.msk.f32.mxu1 %vm4650_vm0, %v4651_v1 }
 0x7f6   : > { %3818 = vmatprep.subr.mxu1 %v4651_v1 }
 0x7f8   : > { %3811 = vmatmul.mubr.msk.f32.vlgmr.msra.gmra.mrb[10].mxu1 %vm992_vm2, %v1714_v13  ;;  %v3644_v13 = vld [vmem:[#allocation9] ss:$0 sm:$0xff] }
 0x7f9   : > { %3820 = vmatprep.mubr.msk.f32.mxu1 %vm4650_vm0, %v4651_v1  ;;  %3819 = vmatpush3.msra.mxu1 %v987_v28 }
 0x7fa   : > { %3939 = vmatprep.subr.bf16.mxu1 %v4649_v0 }
 0x8c7   : > { %v1635_v15 = vpop.f32.mrb[8].mxu1 }
 0x8c8   : > { %v3802_v16 = vpop.f32.mrb[9].mxu1  ;;  %3806 = vmatmul.mubr.msk.f32.vlgmr.msra.gmra.mrb[8].mxu0 %vm992_vm2, %v1635_v15 }
 0x8c9   : > { %3815 = vmatprep.mubr.msk.f32.mxu0 %vm4650_vm0, %v4651_v1 }
 0x8cb   : > { %v1787_v17 = vpop.f32.mrb[10].mxu1 }
 0x8cc   : > { %v1791_v18 = vsel %vm5198_vm3, %v1787_v17, -1e+30  ;;  %v3812_v20 = vpop.f32.mrb[11].mxu1 }
 0x8cd   : > { %v1792_v21 = vsel %vm1068_vm4, %v1791_v18, -inf }
 0x8ce   : > { %1793 = vmax.xlane.f32.xlu0 %v1792_v21 }
 0x8e4   : > { %1803 = vrot.lane.b32.xlu0 %v5181_v11, %s4662_s28 }
 0x95b   : > { %v1794_v22 = vpop.xlane.xlu0 %1793 }
 0x95c   : > { %v1795_v23 = vsub.f32 %v1791_v18, %v1794_v22 }
 0x95e   : > { %v1796_v24 = vmul.f32 1.442695, %v1795_v23 }
 0x95f   : > { %v1804_v25 = vpop.permute.xlu0 %1803 }
 0x960   : > { %4144 = vpow2.f32 %v1796_v24  ;;  %3814 = vmatpush3.msk.msra.mxu0 %vm1086_vm5, %v1804_v25 }
 0x961   : > { %3933 = vmatprep.subr.bf16.mxu0 %v4649_v0 }
 0x96a   : > { %v4145_v26 = vpop.eup %4144 }
 0x96b   : > { %v1798_v27 = vsel %vm1068_vm4, %v4145_v26, 0.0 }
 0x96c   : > { %1799 = vadd.xlane.f32.xlu1 %v1798_v27 }
 0x99b   : > { %v1708_v29 = vpop.f32.mrb[8].mxu0 }
 0x99c   : > { %v1712_v11 = vadd.f32 %v1708_v29, %v5240_v57  ;;  %v3807_v30 = vpop.f32.mrb[9].mxu0  ;;  %v2080_v57 = vld [vmem:[#allocation10 + $0x18] sm:$0xff] }
 0x99d   : > { %v3943_v58 = vpack.c.bf16 %v2080_v57, %v2079_v56 }
 0x9f9   : > { %v1800_v31 = vpop.xlane.xlu1 %1799 }
 0x9fa   : > { %4146 = vrcp.f32 %v1800_v31 }
 0xa04   : > { %v4147_v32 = vpop.eup %4146 }
 0xa05   : > { %v1802_v33 = vmul.f32 %v4147_v32, %v4145_v26 }
 0xa07   : > { %3816 = vmatmul.mubr.msk.f32.vlgmr.msra.gmra.mrb[10].mxu0 %vm1082_vm6, %v1802_v33 }
 0xa08   : > { %3831 = vmatprep.mubr.msk.f32.mxu0 %vm4650_vm0, %v4651_v1  ;;  %3935 = vmatpush3.bf16.msra.mxu0 %v3934_v50 }
 0xa09   : > { %3936 = vmatprep.subr.bf16.mxu0 %v4649_v0 }
 0xada   : > { %v1876_v34 = vpop.f32.mrb[10].mxu0 }
 0xadb   : > { %v3817_v35 = vpop.f32.mrb[11].mxu0  ;;  %3821 = vmatmul.mubr.msk.f32.vlgmr.msra.gmra.mrb[12].mxu1 %vm992_vm2, %v1876_v34 }
 0xadc   : > { %3842 = vmatprep.mubr.msk.f32.mxu1 %vm4650_vm0, %v4651_v1  ;;  %3941 = vmatpush3.bf16.msra.mxu1 %v3940_v53 }
 0xadd   : > { %3942 = vmatprep.subr.bf16.mxu1 %v4649_v0 }
 0xae0   : > { %3944 = vmatpush3.bf16.msra.mxu1 %v3943_v58 }
 0xae1   : > { %3850 = vmatprep.subr.mxu1 %v4651_v1 }
 0xae3   : > { %3843 = vmatmul.mubr.msk.f32.vlgmr.msra.gmra.mrb[14].mxu1 %vm910_vm1, %v5291_v59 }
 0xae4   : > { %3852 = vmatprep.mubr.msk.f32.mxu1 %vm4650_vm0, %v4651_v1 }
 0xbae   : > { %v1949_v37 = vpop.f32.mrb[12].mxu1 }
 0xbaf   : > { %v1953_v38 = vadd.f32 %v1949_v37, %v1712_v11  ;;  %v3822_v39 = vpop.f32.mrb[13].mxu1 }
 0xbb1   : > { %v1960_v40 = vadd.f32 %v3641_v36, %v1953_v38 }
 0xbb3   : > { %v1961_v41 = vadd.f32 %v1960_v40, %v5174_v8  ;;  %v1996_v8 = vld [vmem:[#allocation7 + $0x18] sm:$0xff] }
 0xbb4   : > { %v3937_v55 = vpack.c.bf16 %v1996_v8, %v1995_v54 }
 0xbb5   : > { %v1965_v42 = vsel %vm1964_vm7, %v1961_v41, 0.0 }
 0xbb6   : > { %1966 = vadd.xlane.f32.xlu1 %v1965_v42  ;;  %3938 = vmatpush3.bf16.msra.mxu0 %v3937_v55  ;;  %v2157_v9 = vpop.f32.mrb[14].mxu1 }
 0xbb7   : > { %3845 = vmatprep.subr.mxu0 %v4651_v1  ;;  %v5301_v10 = vadd.f32 %v3646_v7, %v2157_v9  ;;  %v3844_v12 = vpop.f32.mrb[15].mxu1 }
 0xbb9   : > { %2331 = vrot.lane.b32.xlu0 %v5301_v10, %s4654_s4 }
 0xc2b   : > { %v2332_v18 = vpop.permute.xlu0 %2331 }
 0xc43   : > { %v1967_v43 = vpop.xlane.xlu1 %1966 }
 0xc44   : > { %v1969_v44 = vmul.f32 0.03125, %v1967_v43 }
 0xc46   : > { %v1970_v45 = vsub.f32 %v1961_v41, %v1969_v44 }
 0xc48   : > { %v1971_v46 = vmul.f32 %v1970_v45, %v1970_v45 }
 0xc4a   : > { %v1972_v47 = vsel %vm1964_vm7, %v1971_v46, 0.0 }
 0xc4b   : > { %1973 = vadd.xlane.f32.xlu1 %v1972_v47 }
 0xcd8   : > { %v1974_v60 = vpop.xlane.xlu1 %1973 }
 0xcd9   : > { %v1975_v61 = vmul.f32 0.03125, %v1974_v60 }
 0xcdb   : > { %v1976_v62 = vadd.f32 1e-05, %v1975_v61 }
 0xcdd   : > { %4148 = vrsqrt.f32 %v1976_v62 }
 0xce7   : > { %v4149_v63 = vpop.eup %4148 }
 0xce8   : > { %v1978_v3 = vmul.f32 %v4149_v63, %v1970_v45 }
 0xcea   : > { %v1985_v5 = vmul.f32 %v3642_v2, %v1978_v3 }
 0xcec   : > { %v1992_v6 = vadd.f32 %v3643_v4, %v1985_v5 }
 0xcee   : > { %3832 = vmatmul.mubr.msk.f32.vlgmr.msra.gmra.mrb[12].mxu0 %vm910_vm1, %v1992_v6 }
 0xcef   : > { %3847 = vmatprep.mubr.msk.f32.mxu0 %vm4650_vm0, %v4651_v1 }
 0xdc1   : > { %v2073_v14 = vpop.f32.mrb[12].mxu0 }
 0xdc2   : > { %v5305_v15 = vadd.f32 %v3644_v13, %v2073_v14  ;;  %v3833_v16 = vpop.f32.mrb[13].mxu0 }
 0xdc4   : > { %2333 = vrot.lane.b32.xlu1 %v5305_v15, %s4654_s4  ;;  %3846 = vmatpush3.xpose.msk.msra.mxu0 %vm992_vm2, %v5305_v15  ;;  %s891_s4 = scalar_lea.vmem %s5533_s22, %s5167_s18 }
 0xdc5   : > { %3855 = vmatprep.subr.mxu0 %v4651_v1 }
 0xdc7   : > { %3848 = vmatmul.mubr.msk.f32.vlgmr.msra.gmra.mrb[14].mxu0 %vm992_vm2, %v5301_v10 }
 0xdc8   : > { %3857 = vmatprep.mubr.msk.f32.mxu0 %vm4650_vm0, %v4651_v1 }
 0xe36   : > { %v2334_v17 = vpop.permute.xlu1 %2333 }
 0xe37   : > { %3856 = vmatpush3.xpose.msk.msra.mxu0 %vm992_vm2, %v2334_v17 }
 0xe38   : > { %3865 = vmatprep.subr.mxu0 %v4651_v1 }
 0xe3a   : > { %3858 = vmatmul.mubr.msk.f32.vlgmr.msra.gmra.mrb[16].mxu0 %vm992_vm2, %v2332_v18 }
 0xe3b   : > { %3867 = vmatprep.mubr.msk.f32.mxu0 %vm4650_vm0, %v4651_v1 }
 0xe9a   : > { %v2238_v20 = vpop.f32.mrb[14].mxu0 }
 0xe9b   : > { %v2242_v21 = vsel %vm5198_vm3, %v2238_v20, -1e+30  ;;  %v3849_v22 = vpop.f32.mrb[15].mxu0 }
 0xe9c   : > { %v2243_v23 = vsel %vm1068_vm4, %v2242_v21, -inf }
 0xe9d   : > { %2244 = vmax.xlane.f32.xlu0 %v2243_v23 }
 0xf0d   : > { %v2405_v24 = vpop.f32.mrb[16].mxu0 }
 0xf0e   : > { %v2409_v25 = vsel %vm5198_vm3, %v2405_v24, -1e+30  ;;  %v3859_v26 = vpop.f32.mrb[17].mxu0 }
 0xf0f   : > { %v2410_v27 = vsel %vm1068_vm4, %v2409_v25, -inf }
 0xf10   : > { %2411 = vmax.xlane.f32.xlu1 %v2410_v27 }
 0xf21   : > { %2421 = vrot.lane.b32.xlu1 %v5305_v15, %s4656_s5 }
 0xf25   : > { %2646 = vrot.lane.b32.xlu1 %v5305_v15, %s4658_s0 }
 0xf2a   : > { %v2245_v28 = vpop.xlane.xlu0 %2244 }
 0xf2b   : > { %v2246_v29 = vsub.f32 %v2242_v21, %v2245_v28 }
 0xf2d   : > { %v2247_v11 = vmul.f32 1.442695, %v2246_v29 }
 0xf2f   : > { %4150 = vpow2.f32 %v2247_v11 }
 0xf39   : > { %v4151_v30 = vpop.eup %4150 }
 0xf3a   : > { %v2249_v31 = vsel %vm1068_vm4, %v4151_v30, 0.0 }
 0xf3b   : > { %2250 = vadd.xlane.f32.xlu0 %v2249_v31 }
 0xf9d   : > { %v2412_v32 = vpop.xlane.xlu1 %2411 }
 0xf9e   : > { %v2413_v33 = vsub.f32 %v2409_v25, %v2412_v32 }
 0xfa0   : > { %v2414_v34 = vmul.f32 1.442695, %v2413_v33 }
 0xfa1   : > { %v2422_v42 = vpop.permute.xlu1 %2421 }
 0xfa2   : > { %4152 = vpow2.f32 %v2414_v34  ;;  %v3668_v34 = vld [vmem:[#allocation13] ss:$0 sm:$0xff] }
 0xfa5   : > { %v2647_v50 = vpop.permute.xlu1 %2646 }
 0xfac   : > { %v4153_v35 = vpop.eup %4152 }
 0xfad   : > { %v2416_v36 = vsel %vm1068_vm4, %v4153_v35, 0.0 }
 0xfae   : > { %2417 = vadd.xlane.f32.xlu0 %v2416_v36 }
 0xfc4   : > { %2254 = vrot.lane.b32.xlu0 %v5305_v15, %s4655_s1  ;;  %s5529_s1 = sld [smem:[#allocation42_spill]] }
 0xfc8   : > { %2644 = vrot.lane.b32.xlu0 %v5301_v10, %s4658_s0  ;;  %v2251_v37 = vpop.xlane.xlu0 %2250 }
 0xfc9   : > { %4154 = vrcp.f32 %v2251_v37 }
 0xfca   : > { %v2161_v45 = vld [vmem:[%s5529_s1] sm:$0xff]  ;;  %v2162_v46 = vld [vmem:[%s5529_s1 + $0x8] sm:$0xff]  ;;  %v2163_v13 = vld [vmem:[%s5529_s1 + $0x10] sm:$0xff] }
 0xfcb   : > { %3866 = vmatpush3.msra.mxu0 %v2162_v46  ;;  %v2164_v27 = vld [vmem:[%s5529_s1 + $0x18] sm:$0xff]  ;;  %v3164_v46 = vld [vmem:[%s5530_s23 + $0x8] sm:$0xff] }
 0xfcc   : > { %3875 = vmatprep.subr.mxu0 %v4651_v1 }
 0xfd3   : > { %v4155_v39 = vpop.eup %4154 }
 0xfd4   : > { %v2253_v40 = vmul.f32 %v4155_v39, %v4151_v30 }
0x103b   : > { %v2418_v38 = vpop.xlane.xlu0 %2417 }
0x103c   : > { %4156 = vrcp.f32 %v2418_v38 }
0x103f   : > { %v2255_v41 = vpop.permute.xlu0 %2254 }
0x1040   : > { %3851 = vmatpush3.msk.msra.mxu1 %vm1086_vm5, %v2255_v41 }
0x1041   : > { %3853 = vmatmul.mubr.msk.f32.vlgmr.msra.gmra.mrb[16].mxu1 %vm1082_vm6, %v2253_v40  ;;  %3860 = vmatprep.subr.mxu1 %v4651_v1 }
0x1042   : > { %3861 = vmatpush3.msk.msra.mxu1 %vm1086_vm5, %v2422_v42  ;;  %3862 = vmatprep.mubr.msk.f32.mxu1 %vm4650_vm0, %v4651_v1 }
0x1043   : > { %3870 = vmatprep.subr.mxu1 %v4651_v1  ;;  %v2645_v52 = vpop.permute.xlu0 %2644 }
0x1046   : > { %v4157_v43 = vpop.eup %4156 }
0x1047   : > { %v2420_v44 = vmul.f32 %v4157_v43, %v4153_v35 }
0x1049   : > { %3863 = vmatmul.mubr.msk.f32.vlgmr.msra.gmra.mrb[18].mxu1 %vm1082_vm6, %v2420_v44 }
0x104a   : > { %3872 = vmatprep.mubr.msk.f32.mxu1 %vm4650_vm0, %v4651_v1  ;;  %3871 = vmatpush3.msra.mxu1 %v2161_v45 }
0x104b   : > { %3880 = vmatprep.subr.mxu1 %v4651_v1 }
0x1114   : > { %v2327_v47 = vpop.f32.mrb[16].mxu1 }
0x1115   : > { %v3854_v48 = vpop.f32.mrb[17].mxu1  ;;  %3873 = vmatmul.mubr.msk.f32.vlgmr.msra.gmra.mrb[20].mxu1 %vm992_vm2, %v2327_v47 }
0x1116   : > { %3882 = vmatprep.mubr.msk.f32.mxu1 %vm4650_vm0, %v4651_v1  ;;  %v3166_v48 = vld [vmem:[%s5530_s23 + $0x18] sm:$0xff] }
0x111c   : > { %v2494_v49 = vpop.f32.mrb[18].mxu1 }
0x111d   : > { %v3864_v51 = vpop.f32.mrb[19].mxu1  ;;  %3868 = vmatmul.mubr.msk.f32.vlgmr.msra.gmra.mrb[18].mxu0 %vm992_vm2, %v2494_v49 }
0x111e   : > { %3876 = vmatpush3.xpose.msk.msra.mxu0 %vm992_vm2, %v2647_v50  ;;  %3877 = vmatprep.mubr.msk.f32.mxu0 %vm4650_vm0, %v4651_v1 }
0x111f   : > { %3885 = vmatprep.subr.mxu0 %v4651_v1 }
0x1121   : > { %3878 = vmatmul.mubr.msk.f32.vlgmr.msra.gmra.mrb[20].mxu0 %vm992_vm2, %v2645_v52 }
0x1122   : > { %3887 = vmatprep.mubr.msk.f32.mxu0 %vm4650_vm0, %v4651_v1  ;;  %3886 = vmatpush3.msra.mxu0 %v2163_v13 }
0x1123   : > { %3895 = vmatprep.subr.mxu0 %v4651_v1 }
0x11e8   : > { %v2640_v53 = vpop.f32.mrb[20].mxu1 }
0x11e9   : > { %v3874_v54 = vpop.f32.mrb[21].mxu1 }
0x11ea   : > { %v3669_v54 = vld [vmem:[#allocation18] ss:$0 sm:$0xff] }
0x11f0   : > { %v2567_v8 = vpop.f32.mrb[18].mxu0 }
0x11f1   : > { %v2641_v55 = vadd.f32 %v2640_v53, %v2567_v8  ;;  %v3869_v56 = vpop.f32.mrb[19].mxu0 }
0x11f4   : > { %v2718_v57 = vpop.f32.mrb[20].mxu0 }
0x11f5   : > { %v2722_v58 = vsel %vm5198_vm3, %v2718_v57, -1e+30  ;;  %v3879_v60 = vpop.f32.mrb[21].mxu0 }
0x11f6   : > { %v2723_v61 = vsel %vm1068_vm4, %v2722_v58, -inf  ;;  %v3257_v60 = vld [vmem:[#allocation24 + $0x8] sm:$0xff] }
0x11f7   : > { %2724 = vmax.xlane.f32.xlu1 %v2723_v61 }
0x1208   : > { %2887 = vrot.lane.b32.xlu1 %v5305_v15, %s4659_s25 }
0x120c   : > { %2885 = vrot.lane.b32.xlu1 %v5301_v10, %s4659_s25 }
0x1284   : > { %v2725_v62 = vpop.xlane.xlu1 %2724 }
0x1285   : > { %v2726_v63 = vsub.f32 %v2722_v58, %v2725_v62  ;;  %v3256_v58 = vld [vmem:[#allocation24] sm:$0xff]  ;;  %v3258_v62 = vld [vmem:[#allocation24 + $0x10] sm:$0xff] }
0x1286   : > { %v3952_v61 = vpack.c.bf16 %v3257_v60, %v3256_v58 }
0x1287   : > { %v2727_v2 = vmul.f32 1.442695, %v2726_v63  ;;  %v3259_v63 = vld [vmem:[#allocation24 + $0x18] sm:$0xff] }
0x1288   : > { %v2888_v9 = vpop.permute.xlu1 %2887 }
0x1289   : > { %4158 = vpow2.f32 %v2727_v2  ;;  %v3955_v2 = vpack.c.bf16 %v3259_v63, %v3258_v62 }
0x128c   : > { %v2886_v12 = vpop.permute.xlu1 %2885 }
0x1293   : > { %v4159_v3 = vpop.eup %4158 }
0x1294   : > { %v2729_v4 = vsel %vm1068_vm4, %v4159_v3, 0.0 }
0x1295   : > { %2730 = vadd.xlane.f32.xlu0 %v2729_v4 }
0x12ab   : > { %2734 = vrot.lane.b32.xlu0 %v5305_v15, %s4661_s6 }
0x1322   : > { %v2731_v5 = vpop.xlane.xlu0 %2730 }
0x1323   : > { %4160 = vrcp.f32 %v2731_v5 }
0x1326   : > { %v2735_v6 = vpop.permute.xlu0 %2734 }
0x1327   : > { %3881 = vmatpush3.msk.msra.mxu1 %vm1086_vm5, %v2735_v6 }
0x1328   : > { %3890 = vmatprep.subr.mxu1 %v4651_v1 }
0x132d   : > { %v4161_v7 = vpop.eup %4160 }
0x132e   : > { %v2733_v10 = vmul.f32 %v4161_v7, %v4159_v3  ;;  %v3671_v3 = vld [vmem:[%s5531_s26] ss:$0 sm:$0xff] }
0x1330   : > { %3883 = vmatmul.mubr.msk.f32.vlgmr.msra.gmra.mrb[22].mxu1 %vm1082_vm6, %v2733_v10 }
0x1331   : > { %3891 = vmatpush3.xpose.msk.msra.mxu1 %vm992_vm2, %v2888_v9  ;;  %3892 = vmatprep.mubr.msk.f32.mxu1 %vm4650_vm0, %v4651_v1 }
0x1332   : > { %3900 = vmatprep.subr.mxu1 %v4651_v1 }
0x1334   : > { %3893 = vmatmul.mubr.msk.f32.vlgmr.msra.gmra.mrb[24].mxu1 %vm992_vm2, %v2886_v12 }
0x1335   : > { %3902 = vmatprep.mubr.msk.f32.mxu1 %vm4650_vm0, %v4651_v1  ;;  %3901 = vmatpush3.msra.mxu1 %v2164_v27 }
0x1336   : > { %3951 = vmatprep.subr.bf16.mxu1 %v4649_v0 }
0x1403   : > { %v2807_v14 = vpop.f32.mrb[22].mxu1 }
0x1404   : > { %v3884_v16 = vpop.f32.mrb[23].mxu1  ;;  %3888 = vmatmul.mubr.msk.f32.vlgmr.msra.gmra.mrb[22].mxu0 %vm992_vm2, %v2807_v14 }
0x1405   : > { %3897 = vmatprep.mubr.msk.f32.mxu0 %vm4650_vm0, %v4651_v1 }
0x1407   : > { %v2959_v17 = vpop.f32.mrb[24].mxu1 }
0x1408   : > { %v2963_v18 = vsel %vm5198_vm3, %v2959_v17, -1e+30  ;;  %v3894_v20 = vpop.f32.mrb[25].mxu1 }
0x1409   : > { %v2964_v21 = vsel %vm1068_vm4, %v2963_v18, -inf }
0x140a   : > { %2965 = vmax.xlane.f32.xlu0 %v2964_v21 }
0x1420   : > { %2975 = vrot.lane.b32.xlu0 %v5305_v15, %s4662_s28 }
0x1497   : > { %v2966_v22 = vpop.xlane.xlu0 %2965 }
0x1498   : > { %v2967_v23 = vsub.f32 %v2963_v18, %v2966_v22  ;;  %v3673_v18 = vld [vmem:[%s5532_s29] ss:$0 sm:$0xff] }
0x149a   : > { %v2968_v24 = vmul.f32 1.442695, %v2967_v23 }
0x149b   : > { %v2976_v25 = vpop.permute.xlu0 %2975 }
0x149c   : > { %4162 = vpow2.f32 %v2968_v24  ;;  %3896 = vmatpush3.msk.msra.mxu0 %vm1086_vm5, %v2976_v25 }
0x149d   : > { %3945 = vmatprep.subr.bf16.mxu0 %v4649_v0 }
0x14a6   : > { %v4163_v26 = vpop.eup %4162 }
0x14a7   : > { %v2970_v19 = vsel %vm1068_vm4, %v4163_v26, 0.0 }
0x14a8   : > { %2971 = vadd.xlane.f32.xlu1 %v2970_v19 }
0x14d7   : > { %v2880_v15 = vpop.f32.mrb[22].mxu0 }
0x14d8   : > { %v2884_v28 = vadd.f32 %v2880_v15, %v2641_v55  ;;  %v3889_v29 = vpop.f32.mrb[23].mxu0  ;;  %v3670_v55 = vld [vmem:[#allocation19] ss:$0 sm:$0xff] }
0x1535   : > { %v2972_v11 = vpop.xlane.xlu1 %2971 }
0x1536   : > { %4164 = vrcp.f32 %v2972_v11 }
0x1540   : > { %v4165_v30 = vpop.eup %4164 }
0x1541   : > { %v2974_v31 = vmul.f32 %v4165_v30, %v4163_v26 }
0x1543   : > { %3898 = vmatmul.mubr.msk.f32.vlgmr.msra.gmra.mrb[24].mxu0 %vm1082_vm6, %v2974_v31  ;;  %v3675_v31 = vld [vmem:[#allocation21] ss:$0 sm:$0xff] }
0x1544   : > { %3913 = vmatprep.mubr.msk.f32.mxu0 %vm4650_vm0, %v4651_v1 }
0x1616   : > { %v3048_v32 = vpop.f32.mrb[24].mxu0 }
0x1617   : > { %v3899_v33 = vpop.f32.mrb[25].mxu0  ;;  %3903 = vmatmul.mubr.msk.f32.vlgmr.msra.gmra.mrb[26].mxu1 %vm992_vm2, %v3048_v32 }
0x1618   : > { %3924 = vmatprep.mubr.msk.f32.mxu1 %vm4650_vm0, %v4651_v1  ;;  %v3163_v1 = vld [vmem:[%s5530_s23] sm:$0xff]  ;;  %3953 = vmatpush3.bf16.msra.mxu1 %v3952_v61  ;;  %v3676_v33 = vld [vmem:[#allocation22] ss:$0 sm:$0xff] }
0x1619   : > { %v3946_v47 = vpack.c.bf16 %v3164_v46, %v3163_v1  ;;  %3954 = vmatprep.subr.bf16.mxu1 %v4649_v0 }
0x161b   : > { %3947 = vmatpush3.bf16.msra.mxu0 %v3946_v47 }
0x161c   : > { %3948 = vmatprep.subr.bf16.mxu0 %v4649_v0  ;;  %3956 = vmatpush3.bf16.msra.mxu1 %v3955_v2 }
0x16ea   : > { %v3121_v35 = vpop.f32.mrb[26].mxu1 }
0x16eb   : > { %v3125_v36 = vadd.f32 %v3121_v35, %v2884_v28  ;;  %v3904_v37 = vpop.f32.mrb[27].mxu1 }
0x16ed   : > { %v3132_v38 = vadd.f32 %v3668_v34, %v3125_v36 }
0x16ef   : > { %v3133_v39 = vadd.f32 %v3132_v38, %v5291_v59  ;;  %v3165_v59 = vld [vmem:[%s5530_s23 + $0x10] sm:$0xff] }
0x16f0   : > { %v3949_v49 = vpack.c.bf16 %v3166_v48, %v3165_v59 }
0x16f1   : > { %v3136_v40 = vsel %vm1964_vm7, %v3133_v39, 0.0 }
0x16f2   : > { %3137 = vadd.xlane.f32.xlu1 %v3136_v40  ;;  %3950 = vmatpush3.bf16.msra.mxu0 %v3949_v49 }
0x177f   : > { %v3138_v41 = vpop.xlane.xlu1 %3137 }
0x1780   : > { %v3139_v42 = vmul.f32 0.03125, %v3138_v41 }
0x1782   : > { %v3140_v43 = vsub.f32 %v3133_v39, %v3139_v42 }
0x1784   : > { %v3141_v44 = vmul.f32 %v3140_v43, %v3140_v43 }
0x1786   : > { %v3142_v45 = vsel %vm1964_vm7, %v3141_v44, 0.0 }
0x1787   : > { %3143 = vadd.xlane.f32.xlu1 %v3142_v45 }
0x1814   : > { %v3144_v50 = vpop.xlane.xlu1 %3143 }
0x1815   : > { %v3145_v51 = vmul.f32 0.03125, %v3144_v50 }
0x1817   : > { %v3146_v52 = vadd.f32 1e-05, %v3145_v51 }
0x1819   : > { %4166 = vrsqrt.f32 %v3146_v52 }
0x1823   : > { %v4167_v53 = vpop.eup %4166 }
0x1824   : > { %v3148_v8 = vmul.f32 %v4167_v53, %v3140_v43 }
0x1826   : > { %v3155_v56 = vmul.f32 %v3669_v54, %v3148_v8 }
0x1828   : > { %v3162_v57 = vadd.f32 %v3670_v55, %v3155_v56 }
0x182a   : > { %3914 = vmatmul.mubr.msk.f32.vlgmr.msra.gmra.mrb[26].mxu0 %vm910_vm1, %v3162_v57 }
0x18fd   : > { %v3243_v4 = vpop.f32.mrb[26].mxu0 }
0x18fe   : > { %v3244_v5 = vadd.f32 %v3671_v3, %v3243_v4  ;;  %v3915_v6 = vpop.f32.mrb[27].mxu0 }
0x1900   : > { %v3247_v7 = vmul.f32 %v3244_v5, %v3244_v5 }
0x1902   : > { %v3248_v9 = vmul.f32 %v3247_v7, %v3244_v5 }
0x1904   : > { %v3249_v10 = vmul.f32 0.044715, %v3248_v9 }
0x1906   : > { %v3250_v12 = vadd.f32 %v3249_v10, %v3244_v5 }
0x1908   : > { %v3251_v13 = vmul.f32 0.7978846, %v3250_v12 }
0x190a   : > { %4168 = vtanh.f32 %v3251_v13 }
0x1914   : > { %v4169_v14 = vpop.eup %4168 }
0x1915   : > { %v3253_v16 = vadd.f32 1.0, %v4169_v14 }
0x1917   : > { %v3254_v0 = vmul.f32 0.5, %v3253_v16 }
0x1919   : > { %v3255_v17 = vmul.f32 %v3254_v0, %v3244_v5 }
0x191b   : > { %3925 = vmatmul.mubr.msk.f32.vlgmr.msra.gmra.mrb[28].mxu1 %vm910_vm1, %v3255_v17 }
0x19ee   : > { %v3336_v20 = vpop.f32.mrb[28].mxu1 }
0x19ef   : > { %v3337_v21 = vadd.f32 %v3673_v18, %v3336_v20  ;;  %v3926_v22 = vpop.f32.mrb[29].mxu1 }
0x19f1   : > { %v3340_v23 = vadd.f32 %v3337_v21, %v3162_v57 }
0x19f3   : > { %v3343_v24 = vsel %vm1964_vm7, %v3340_v23, 0.0 }
0x19f4   : > { %3344 = vadd.xlane.f32.xlu1 %v3343_v24 }
0x1a81   : > { %v3345_v25 = vpop.xlane.xlu1 %3344 }
0x1a82   : > { %v3346_v26 = vmul.f32 0.03125, %v3345_v25 }
0x1a84   : > { %v3347_v19 = vsub.f32 %v3340_v23, %v3346_v26 }
0x1a86   : > { %v3348_v27 = vmul.f32 %v3347_v19, %v3347_v19 }
0x1a88   : > { %v3349_v15 = vsel %vm1964_vm7, %v3348_v27, 0.0 }
0x1a89   : > { %3350 = vadd.xlane.f32.xlu1 %v3349_v15 }
0x1b16   : > { %v3351_v28 = vpop.xlane.xlu1 %3350 }
0x1b17   : > { %v3352_v29 = vmul.f32 0.03125, %v3351_v28 }
0x1b19   : > { %v3353_v11 = vadd.f32 1e-05, %v3352_v29 }
0x1b1b   : > { %4170 = vrsqrt.f32 %v3353_v11 }
0x1b25   : > { %v4171_v30 = vpop.eup %4170 }
0x1b26   : > { %v3355_v32 = vmul.f32 %v4171_v30, %v3347_v19 }
0x1b28   : > { %v3362_v34 = vmul.f32 %v3675_v31, %v3355_v32 }
0x1b2a   : > { %v3369_v35 = vadd.f32 %v3676_v33, %v3362_v34 }
0x1b2c   : > { %3370 = vst.msk [vmem:[%s891_s4] sm:$0x7] %vm1964_vm7, %v3369_v35 }
0x1b2d PF: > { %s5534_s5 = sld [smem:[#allocation33_spill]] }
0x1b33   : > { %s40_s3 = sadd.s32 1, %s5534_s5  }
0x1b34   : > { %p37_p0 = scmp.ge.s32.totalorder %s40_s3, 4  }
0x1b36   :  { %39 = sbr.rel (!%p37_p0) target bundleno = 21 (0x15), region = 202 }
0x1b3d   :  { %3390 = vsyncpa [#allocation3], 1 }
0x1b3e   :  { %3392 = vsyncpa [#allocation3 + $0x1], 1 }
0x1b3f   :  { %3393 = vsyncpa [#allocation5], 1 }
0x1b40   :  { %3394 = vsyncpa [#allocation8], 1 }
0x1b41   :  { %3395 = vsyncpa [#allocation11], 1 }
0x1b42   :  { %3396 = vsyncpa [#allocation14], 1 }
0x1b43   :  { %3397 = vsyncpa [#allocation17], 1 }
0x1b44   :  { %3398 = vsyncpa [#allocation20], 1 }
0x1b45   :  { %3399 = vsyncpa [#allocation23], 1 }

</bundles_post_ra>
